<compile_context>
chip_gen: v6e
topology: v6e:2x2x1
jax: 0.10.0
libtpu: 0.0.40
codegen_flags: <defaults>
</compile_context>

<pallas_src>
import math

import numpy as np
import jax
import jax.numpy as jnp
from jax.experimental import pallas as pl
from jax.experimental.pallas import tpu as pltpu


def _pe_kernel(x_ref, w_ref, lt_ref, ph_ref, o_ref):
    # x_ref : (TR, g*n_dims)   folded locations (g original rows per folded row)
    # w_ref : (g*n_dims, g*D)  constant 0/1 lane-expansion matrix (MXU "gather")
    # lt_ref: (1, g*D)         2^l * pi per output lane
    # ph_ref: (1, g*D)         0 for sin channels, pi/2 for cos channels
    # o_ref : (TR, g*D)        lane-dense encoded output
    v = jnp.dot(
        x_ref[...],
        w_ref[...],
        preferred_element_type=jnp.float32,
        precision=jax.lax.Precision.HIGHEST,
    )
    o_ref[...] = jnp.sin(v * lt_ref[...] + ph_ref[...])


def _make_constants(num_terms: int, n_dims: int, g: int):
    """Host-side constant construction (selection matrix, scales, phases)."""
    L = num_terms
    D = 2 * L * n_dims
    lanes = g * D

    c = np.arange(lanes)
    r = c // D                       # which original row inside the fold group
    cc = c % D                       # encoding channel
    l = cc // (2 * n_dims)           # frequency index
    rem = cc % (2 * n_dims)
    s = rem // n_dims                # 0 -> sin, 1 -> cos
    d = rem % n_dims                 # spatial dim
    j = r * n_dims + d               # source lane in the folded input row

    W = np.zeros((g * n_dims, lanes), np.float32)
    W[j, c] = 1.0
    lterms = (np.exp2(l.astype(np.float32)) * np.pi).reshape(1, lanes).astype(np.float32)
    phase = (s.astype(np.float32) * (np.pi / 2.0)).reshape(1, lanes).astype(np.float32)
    return jnp.asarray(W), jnp.asarray(lterms), jnp.asarray(phase)


def positional_encoding(locations, num_terms: int, n_dims: int, max_tile_rows: int = 1024):
    """Pallas implementation of PositionalEncoding.forward."""
    L = num_terms
    D = 2 * L * n_dims
    orig_shape = locations.shape
    assert orig_shape[-1] == n_dims

    x = locations.reshape(-1, n_dims).astype(jnp.float32)
    N = x.shape[0]

    # Fold g rows into the lane dimension so the output lane width is a
    # multiple of 128 (lane-dense stores / full-occupancy EUP).
    g = 128 // math.gcd(D, 128)
    lanes = g * D                    # multiple of 128
    kdim = g * n_dims                # folded input lane width (matmul K)

    G = -(-N // g)                                   # number of folded rows
    TR = min(max_tile_rows, ((G + 7) // 8) * 8)      # folded rows per block
    Gpad = ((G + TR - 1) // TR) * TR
    Npad = Gpad * g

    if Npad != N:
        x = jnp.pad(x, ((0, Npad - N), (0, 0)))      # tiny (N, n_dims) pad only
    xg = x.reshape(Gpad, kdim)                       # byte-identical reshape

    W, lterms, phase = _make_constants(L, n_dims, g)

    out = pl.pallas_call(
        _pe_kernel,
        out_shape=jax.ShapeDtypeStruct((Gpad, lanes), jnp.float32),
        grid_spec=pltpu.PrefetchScalarGridSpec(
            num_scalar_prefetch=0,
            grid=(Gpad // TR,),
            in_specs=[
                pl.BlockSpec((TR, kdim), lambda i: (i, 0)),     # folded locations tile
                pl.BlockSpec((kdim, lanes), lambda i: (0, 0)),  # resident 0/1 expansion
                pl.BlockSpec((1, lanes), lambda i: (0, 0)),     # resident 2^l*pi
                pl.BlockSpec((1, lanes), lambda i: (0, 0)),     # resident phase
            ],
            out_specs=pl.BlockSpec((TR, lanes), lambda i: (i, 0)),
        ),
        compiler_params=pltpu.CompilerParams(
            dimension_semantics=("parallel",),
        ),
    )(xg, W, lterms, phase)

    out = out.reshape(Npad, D)[:N]                   # byte-identical unfold + unpad
    return out.reshape(*orig_shape[:-1], D)


def positional_encoding_ref(locations, num_terms: int, n_dims: int):
    """Pure-JAX reference mirroring the torch forward exactly."""
    L = num_terms
    l_vals = jnp.repeat(jnp.arange(L, dtype=jnp.float32), 2 * n_dims)
    lterms = jnp.exp2(l_vals) * jnp.pi
    x = jnp.tile(locations.astype(jnp.float32), (1,) * (locations.ndim - 1) + (2 * L,))
    v = x * lterms
    idx = jnp.arange(2 * L * n_dims) % (2 * n_dims)
    sin_mask = idx < n_dims
    return jnp.where(sin_mask, jnp.sin(v), jnp.cos(v))


if __name__ == "__main__":
    key = jax.random.PRNGKey(0)
    num_terms = 4   # L
    n_dims = 3
    # locations in [-1, 1], arbitrary leading dims (batch=2, points=100)
    locations = jax.random.uniform(key, (2, 100, n_dims), jnp.float32, -1.0, 1.0)

    out = positional_encoding(locations, num_terms, n_dims)
    out = jax.block_until_ready(out)

    ref = positional_encoding_ref(locations, num_terms, n_dims)
    assert out.shape == (2, 100, 2 * num_terms * n_dims), out.shape
    assert jnp.allclose(out, ref, atol=1e-4, rtol=1e-4), "mismatch vs reference"

    print("KERNEL_OK")
</pallas_src>

<mosaic_0001>
module attributes {stable_mosaic.version = 11 : i64} {
  func.func @_pe_kernel(%arg0: i32, %arg1: memref<16x48xf32, #tpu.memory_space<vmem>>, %arg2: memref<48x384xf32, #tpu.memory_space<vmem>>, %arg3: memref<1x384xf32, #tpu.memory_space<vmem>>, %arg4: memref<1x384xf32, #tpu.memory_space<vmem>>, %arg5: memref<16x384xf32, #tpu.memory_space<vmem>>) attributes {dimension_semantics = [#tpu.dimension_semantics<parallel>], iteration_bounds = array<i64: 1>, scalar_prefetch = 0 : i64, scratch_operands = 0 : i64, tpu.core_type = #tpu.core_type<tc>, window_params = [{transform_indices = @transform_0, window_bounds = array<i64: 16, 48>}, {pipeline_mode = #tpu.pipeline_mode<synchronous>, transform_indices = @transform_1, window_bounds = array<i64: 48, 384>}, {pipeline_mode = #tpu.pipeline_mode<synchronous>, transform_indices = @transform_2, window_bounds = array<i64: 1, 384>}, {pipeline_mode = #tpu.pipeline_mode<synchronous>, transform_indices = @transform_3, window_bounds = array<i64: 1, 384>}, {transform_indices = @transform_4, window_bounds = array<i64: 16, 384>}]} {
    %c0 = arith.constant 0 : index
    %c0_0 = arith.constant 0 : index
    %0 = vector.load %arg1[%c0, %c0_0] : memref<16x48xf32, #tpu.memory_space<vmem>>, vector<16x48xf32>
    %c0_1 = arith.constant 0 : index
    %c0_2 = arith.constant 0 : index
    %1 = vector.load %arg2[%c0_1, %c0_2] : memref<48x384xf32, #tpu.memory_space<vmem>>, vector<48x384xf32>
    %cst = arith.constant dense<0.000000e+00> : vector<16x384xf32>
    %2 = tpu.matmul %0, %1, %cst {dimension_numbers = #tpu.dot_dimension_numbers<[1], [0], [0], [1], [0, 0, 1, 1], [], []>, precision = #tpu.contract_precision<fp32>} : vector<16x48xf32>, vector<48x384xf32>, vector<16x384xf32> -> vector<16x384xf32>
    %c0_3 = arith.constant 0 : index
    %c0_4 = arith.constant 0 : index
    %3 = vector.load %arg3[%c0_3, %c0_4] : memref<1x384xf32, #tpu.memory_space<vmem>>, vector<1x384xf32>
    %4 = vector.broadcast %3 : vector<1x384xf32> to vector<16x384xf32>
    %5 = arith.mulf %2, %4 : vector<16x384xf32>
    %c0_5 = arith.constant 0 : index
    %c0_6 = arith.constant 0 : index
    %6 = vector.load %arg4[%c0_5, %c0_6] : memref<1x384xf32, #tpu.memory_space<vmem>>, vector<1x384xf32>
    %7 = vector.broadcast %6 : vector<1x384xf32> to vector<16x384xf32>
    %8 = arith.addf %5, %7 : vector<16x384xf32>
    %9 = math.sin %8 : vector<16x384xf32>
    %c0_7 = arith.constant 0 : index
    %c0_8 = arith.constant 0 : index
    %10 = vector.load %arg5[%c0_7, %c0_8] : memref<16x384xf32, #tpu.memory_space<vmem>>, vector<16x384xf32>
    tpu.vector_store %arg5[%c0_7, %c0_8], %9 {strides = array<i32>} : memref<16x384xf32, #tpu.memory_space<vmem>>, vector<16x384xf32>,
    return
  }
  func.func @transform_0(%arg0: i32) -> (i32, i32) {
    %c0_i32 = arith.constant 0 : i32
    %c0_i32_0 = arith.constant 0 : i32
    return %arg0, %c0_i32 : i32, i32
  }
  func.func @transform_1(%arg0: i32) -> (i32, i32) {
    %c0_i32 = arith.constant 0 : i32
    %c0_i32_0 = arith.constant 0 : i32
    %c0_i32_1 = arith.constant 0 : i32
    return %c0_i32, %c0_i32_0 : i32, i32
  }
  func.func @transform_2(%arg0: i32) -> (i32, i32) {
    %c0_i32 = arith.constant 0 : i32
    %c0_i32_0 = arith.constant 0 : i32
    %c0_i32_1 = arith.constant 0 : i32
    return %c0_i32, %c0_i32_0 : i32, i32
  }
  func.func @transform_3(%arg0: i32) -> (i32, i32) {
    %c0_i32 = arith.constant 0 : i32
    %c0_i32_0 = arith.constant 0 : i32
    %c0_i32_1 = arith.constant 0 : i32
    return %c0_i32, %c0_i32_0 : i32, i32
  }
  func.func @transform_4(%arg0: i32) -> (i32, i32) {
    %c0_i32 = arith.constant 0 : i32
    %c0_i32_0 = arith.constant 0 : i32
    return %arg0, %c0_i32 : i32, i32
  }
}

</mosaic_0001>

<bundles_post_ra>
// kernel: tpu_custom_call.1
= control target key start
LH: loop header
LB: loop body
LE: loop exit
PB: predicated region body
PF: predicated region fallthrough
CT: control target
= control target key end

     0   :  { %9 = vsyncpa [#allocation3], 0  ;;  %s3202_s0 = inlined_call_operand.hbm [shape: f32[16,48], index: 0, kind: input, shape index: {}]   ;;  %s3203_s1 = inlined_call_operand.hbm [shape: f32[48,384], index: 1, kind: input, shape index: {}]   ;;  %s3204_s2 = inlined_call_operand.vmem [shape: f32[1,384], index: 2, kind: input, shape index: {}]   ;;  %s3205_s3 = inlined_call_operand.hbm [shape: f32[1,384], index: 3, kind: input, shape index: {}]   ;;  %s3206_s4 = inlined_call_operand.hbm [shape: f32[16,384], index: 4, kind: output, shape index: {}]  }
   0x1   :  { %10 = vsyncpa [#allocation6], 0 }
   0x2   :  { %11 = vsyncpa [#allocation4], 0  ;;  %s2287_s15 = smov [#allocation5]  }
   0x3   :  { %s29_s16 = sshll.u32 %s2287_s15, 4  ;;  %s30_s16 = int_to_ptr.vmem [resolvable:$true] %s29_s16 }
   0x4   :  { %s2209_s17 = scalar_lea.vmem %s30_s16, 2304  ;;  %p2214_p1 = scmp.lt.s32.totalorder %s30_s16, %s30_s16 }
   0x5   :  { %p2210_p0 = scmp.ne.s32.totalorder %s30_s16, %s2209_s17  ;;  %p2215_p2 = scmp.lt.s32.totalorder %s2209_s17, %s2209_s17 }
   0x7   :  { %p2216_p3 = por %p2215_p2, %p2214_p1 }
   0x9   :  { %p2217_p4 = pnand %p2216_p3, %p2210_p0 }
   0xb   :  { %2220 = shalt.err (!%p2217_p4)
}
   0xc   :  { %s2288_s18 = smov 384   ;;  %s2289_s19 = smov 24  }
   0xd   :  { %35 = dma.hbm_to_vmem [thread:$0]  %s3203_s1, 2304, %s30_s16, [#allocation6], %s2288_s18, %s2288_s18, %s2289_s19  }
   0xe   :  { %s2290_s22 = smov [#allocation2]  }
   0xf   :  { %s17_s23 = sshll.u32 %s2290_s22, 4  ;;  %s18_s23 = int_to_ptr.vmem [resolvable:$true] %s17_s23 }
  0x10   :  { %s2229_s24 = scalar_lea.vmem %s18_s23, 256  ;;  %p2234_p6 = scmp.lt.s32.totalorder %s18_s23, %s18_s23 }
  0x11   :  { %p2230_p5 = scmp.ne.s32.totalorder %s18_s23, %s2229_s24  ;;  %p2235_p7 = scmp.lt.s32.totalorder %s2229_s24, %s2229_s24 }
  0x13   :  { %p2236_p8 = por %p2235_p7, %p2234_p6 }
  0x15   :  { %p2237_p9 = pnand %p2236_p8, %p2230_p5 }
  0x17   :  { %2240 = shalt.err (!%p2237_p9)
}
  0x18   :  { %s2291_s25 = smov 128   ;;  %s2292_s26 = smov 8  }
  0x19   :  { %23 = dma.hbm_to_vmem [thread:$0]  %s3202_s0, 256, %s18_s23, [#allocation3], %s2291_s25, %s2291_s25, %s2292_s26  }
  0x1a   :  { %s2293_s29 = smov [#allocation7]  }
  0x1b   :  { %s44_s30 = sshll.u32 %s2293_s29, 4  ;;  %s45_s30 = int_to_ptr.vmem [resolvable:$true] %s44_s30 }
  0x1c   :  { %s2249_s1 = scalar_lea.vmem %s45_s30, 48  ;;  %s2253_s5 = scalar_lea.vmem %s45_s30, 64 }
  0x1d   :  { %p2250_p10 = scmp.ne.s32.totalorder %s45_s30, %s2249_s1  ;;  %p2254_p11 = scmp.lt.s32.totalorder %s45_s30, %s45_s30 }
  0x1e   :  { %p2255_p12 = scmp.lt.s32.totalorder %s2253_s5, %s2249_s1 }
  0x20   :  { %p2256_p13 = por %p2255_p12, %p2254_p11 }
  0x22   :  { %p2257_p0 = pnand %p2256_p13, %p2250_p10 }
  0x24   :  { %2260 = shalt.err (!%p2257_p0)
}
  0x25   :  { %47 = dma.hbm_to_vmem [thread:$0]  %s3205_s3, 48, %s45_s30, [#allocation6]  }
  0x26   :  { %2281 = dma.done.wait [#allocation3], 256  }
  0x27   :  { %2282 = vsyncadd [#allocation3], 4294967040 }
  0x28   :  { %2283 = dma.done.wait [#allocation6], 2352  }
  0x29   :  { %2284 = vsyncadd [#allocation6], 4294964944  ;;  %v2294_v0 = vmov 0.0   ;;  %v75_v1 = vld [vmem:[#allocation5 + $0x80] sm:$0xff]  ;;  %v74_v2 = vld [vmem:[#allocation5 + $0x78] sm:$0xff]  ;;  %vm77_vm0 = vcmask 392192  }
  0x2a   :  { %160 = vmatprep.mubr.f32.mxu0 %v2294_v0  ;;  %307 = vmatprep.mubr.f32.mxu1 %v2294_v0  ;;  %v72_v3 = vld [vmem:[#allocation5 + $0x68] sm:$0xff]  ;;  %v2341_v4 = vand.u32 4294901760, %v75_v1  ;;  %v2343_v5 = vand.u32 4294901760, %v74_v2  ;;  %v71_v7 = vld [vmem:[#allocation5 + $0x60] sm:$0xff]  ;;  %v69_v8 = vld [vmem:[#allocation5 + $0x50] sm:$0xff] }
  0x2b   :  { %v2345_v6 = vand.u32 4294901760, %v72_v3  ;;  %v68_v9 = vld [vmem:[#allocation5 + $0x48] sm:$0xff]  ;;  %v2347_v10 = vand.u32 4294901760, %v71_v7  ;;  %v2349_v11 = vand.u32 4294901760, %v69_v8  ;;  %v66_v13 = vld [vmem:[#allocation5 + $0x38] sm:$0xff]  ;;  %v65_v14 = vld [vmem:[#allocation5 + $0x30] sm:$0xff] }
  0x2c   :  { %v2351_v12 = vand.u32 4294901760, %v68_v9  ;;  %v63_v15 = vld [vmem:[#allocation5 + $0x20] sm:$0xff]  ;;  %105 = vmatprep.subr.mxu0 %v2341_v4  ;;  %v2354_v16 = vand.u32 4294901760, %v66_v13  ;;  %v2356_v17 = vand.u32 4294901760, %v65_v14  ;;  %v2361_v19 = vsub.f32 %v75_v1, %v2341_v4  ;;  %v62_v20 = vld [vmem:[#allocation5 + $0x18] sm:$0xff]  ;;  %v60_v21 = vld [vmem:[#allocation5 + $0x8] sm:$0xff] }
  0x2d   :  { %v2358_v18 = vand.u32 4294901760, %v63_v15  ;;  %v59_v22 = vld [vmem:[#allocation5] sm:$0xff]  ;;  %107 = vmatpush1.msra.mxu0 %v2343_v5  ;;  %v2364_v23 = vand.u32 4294901760, %v62_v20  ;;  %v2367_v24 = vsub.f32 %v74_v2, %v2343_v5  ;;  %v2369_v25 = vand.u32 4294901760, %v60_v21  ;;  %v57_v27 = vld [vmem:[#allocation2] sm:$0xff]  ;;  %v58_v56 = vld [vmem:[#allocation2 + $0x8] sm:$0xff] }
  0x2e   :  { %v2372_v26 = vsub.f32 %v72_v3, %v2345_v6  ;;  %109 = vmatprep.subr.mxu0 %v2345_v6  ;;  %v205_v28 = vand.u32 4294901760, %v2361_v19  ;;  %v2376_v29 = vand.u32 4294901760, %v59_v22  ;;  %v2379_v30 = vsub.f32 %v71_v7, %v2347_v10 }
  0x2f   :  { %v2382_v31 = vsub.f32 %v69_v8, %v2349_v11  ;;  %111 = vmatpush1.msra.mxu0 %v2347_v10  ;;  %v211_v32 = vand.u32 4294901760, %v2367_v24  ;;  %v79_v34 = vsel %vm77_vm0, %v57_v27, 0  ;;  %v2389_v35 = vsub.f32 %v68_v9, %v2351_v12 }
  0x30   :  { %v217_v33 = vand.u32 4294901760, %v2372_v26  ;;  %113 = vmatprep.subr.mxu0 %v2349_v11  ;;  %v206_v36 = vsub.f32 %v2361_v19, %v205_v28  ;;  %v223_v37 = vand.u32 4294901760, %v2379_v30  ;;  %v2397_v39 = vand.u32 4294901760, %v79_v34 }
  0x31   :  { %v229_v38 = vand.u32 4294901760, %v2382_v31  ;;  %115 = vmatpush1.msra.mxu0 %v2351_v12  ;;  %v212_v40 = vsub.f32 %v2367_v24, %v211_v32  ;;  %v235_v42 = vand.u32 4294901760, %v2389_v35  ;;  %v2408_v43 = vsub.f32 %v66_v13, %v2354_v16 }
  0x32   :  { %v218_v41 = vsub.f32 %v2372_v26, %v217_v33  ;;  %117 = vmatprep.subr.mxu0 %v2354_v16  ;;  %v207_v44 = vand.u32 4294901760, %v206_v36  ;;  %v224_v45 = vsub.f32 %v2379_v30, %v223_v37  ;;  %v2418_v47 = vsub.f32 %v79_v34, %v2397_v39 }
  0x33   :  { %v230_v46 = vsub.f32 %v2382_v31, %v229_v38  ;;  %119 = vmatpush1.msra.mxu0 %v2356_v17  ;;  %v213_v48 = vand.u32 4294901760, %v212_v40  ;;  %v236_v50 = vsub.f32 %v2389_v35, %v235_v42  ;;  %v241_v51 = vand.u32 4294901760, %v2408_v43 }
  0x34   :  { %v219_v49 = vand.u32 4294901760, %v218_v41  ;;  %121 = vmatprep.subr.mxu0 %v2358_v18  ;;  %208 = vmatprep.subr.mxu1 %v207_v44  ;;  %v225_v52 = vand.u32 4294901760, %v224_v45  ;;  %v2427_v54 = vand.u32 4294901760, %v2418_v47  ;;  %v2430_v55 = vsub.f32 %v65_v14, %v2356_v17 }
  0x35   :  { %v231_v53 = vand.u32 4294901760, %v230_v46  ;;  %123 = vmatpush1.msra.mxu0 %v2364_v23  ;;  %214 = vmatpush1.msra.mxu1 %v213_v48  ;;  %v237_v57 = vand.u32 4294901760, %v236_v50  ;;  %v242_v58 = vsub.f32 %v2408_v43, %v241_v51  ;;  %v2437_v59 = vsub.f32 %v63_v15, %v2358_v18 }
  0x36   :  { %v2440_v60 = vsub.f32 %v62_v20, %v2364_v23  ;;  %125 = vmatprep.subr.mxu0 %v2369_v25  ;;  %220 = vmatprep.subr.mxu1 %v219_v49  ;;  %v164_v61 = vsub.f32 %v2418_v47, %v2427_v54  ;;  %v247_v62 = vand.u32 4294901760, %v2430_v55  ;;  %v2447_v63 = vsub.f32 %v60_v21, %v2369_v25 }
  0x37   :  { %v2450_v1 = vsub.f32 %v59_v22, %v2376_v29  ;;  %127 = vmatpush1.msra.mxu0 %v2376_v29  ;;  %226 = vmatpush1.msra.mxu1 %v225_v52  ;;  %v243_v2 = vand.u32 4294901760, %v242_v58  ;;  %v253_v3 = vand.u32 4294901760, %v2437_v59  ;;  %v82_v8 = vsel %vm77_vm0, %v58_v56, 0 }
  0x38   :  { %v259_v7 = vand.u32 4294901760, %v2440_v60  ;;  %232 = vmatprep.subr.mxu1 %v231_v53  ;;  %344 = vmatprep.subr.mxu0 %v2361_v19  ;;  %v2457_v9 = vand.u32 4294901760, %v164_v61  ;;  %v248_v13 = vsub.f32 %v2430_v55, %v247_v62  ;;  %v265_v14 = vand.u32 4294901760, %v2447_v63  ;;  %v76_v19 = vld [vmem:[#allocation5 + $0x88] sm:$0xff] }
  0x39   :  { %v271_v15 = vand.u32 4294901760, %v2450_v1  ;;  %238 = vmatpush1.msra.mxu1 %v237_v57  ;;  %v254_v20 = vsub.f32 %v2437_v59, %v253_v3  ;;  %v2470_v22 = vand.u32 4294901760, %v82_v8 }
  0x3a   :  { %v260_v21 = vsub.f32 %v2440_v60, %v259_v7  ;;  %166 = vmatmul.mubr.f32.vlgmr.msra.gmra.mxu0 %v2457_v9  ;;  %244 = vmatprep.subr.mxu1 %v243_v2  ;;  %v249_v27 = vand.u32 4294901760, %v248_v13  ;;  %v266_v34 = vsub.f32 %v2447_v63, %v265_v14 }
  0x3b   :  { %v272_v36 = vsub.f32 %v2450_v1, %v271_v15  ;;  %347 = vmatpush1.msra.mxu0 %v2367_v24  ;;  %v255_v40 = vand.u32 4294901760, %v254_v20  ;;  %171 = vmatprep.mubr.f32.mxu0 %v2294_v0  ;;  %v2482_v44 = vsub.f32 %v82_v8, %v2470_v22  ;;  %v73_v24 = vld [vmem:[#allocation5 + $0x70] sm:$0xff] }
  0x3c   :  { %v261_v41 = vand.u32 4294901760, %v260_v21  ;;  %350 = vmatprep.subr.mxu0 %v2372_v26  ;;  %250 = vmatpush1.msra.mxu1 %v249_v27  ;;  %v267_v45 = vand.u32 4294901760, %v266_v34  ;;  %v2532_v26 = vand.u32 4294901760, %v76_v19 }
  0x3d   :  { %v273_v46 = vand.u32 4294901760, %v272_v36  ;;  %353 = vmatpush1.msra.mxu0 %v2379_v30  ;;  %256 = vmatprep.subr.mxu1 %v255_v40  ;;  %v2487_v48 = vand.u32 4294901760, %v2482_v44  ;;  %v70_v30 = vld [vmem:[#allocation5 + $0x58] sm:$0xff] }
  0x3e   :  { %356 = vmatprep.subr.mxu0 %v2382_v31  ;;  %262 = vmatpush1.msra.mxu1 %v261_v41  ;;  %v67_v31 = vld [vmem:[#allocation5 + $0x40] sm:$0xff] }
  0x3f   :  { %359 = vmatpush1.msra.mxu0 %v2389_v35  ;;  %268 = vmatprep.subr.mxu1 %v267_v45  ;;  %v175_v49 = vsub.f32 %v2482_v44, %v2487_v48  ;;  %v64_v35 = vld [vmem:[#allocation5 + $0x28] sm:$0xff]  ;;  %v2689_v45 = vld [vmem:[%s3204_s2] sm:$0x7]  ;;  %s2301_s2 = smov [#allocation8]  }
  0x40   :  { %362 = vmatprep.subr.mxu0 %v2408_v43  ;;  %274 = vmatpush1.msra.mxu1 %v273_v46  ;;  %s1963_s8 = sshll.u32 %s2301_s2, 4  ;;  %s1964_s8 = int_to_ptr.vmem [resolvable:$true] %s1963_s8 }
  0x41   :  { %365 = vmatpush1.msra.mxu0 %v2430_v55  ;;  %v2495_v50 = vand.u32 4294901760, %v175_v49  ;;  %309 = vmatmul.mubr.f32.vlgmr.msra.gmra.mxu1 %v2397_v39  ;;  %s2261_s9 = scalar_lea.vmem %s1964_s8, 768  ;;  %p2266_p2 = scmp.lt.s32.totalorder %s1964_s8, %s1964_s8 }
  0x42   :  { %368 = vmatprep.subr.mxu0 %v2437_v59  ;;  %448 = vmatprep.subr.mxu1 %v2341_v4  ;;  %p2262_p1 = scmp.ne.s32.totalorder %s1964_s8, %s2261_s9  ;;  %p2267_p3 = scmp.lt.s32.totalorder %s2261_s9, %s2261_s9 }
  0x43   :  { %177 = vmatmul.mubr.f32.gmra.mxu0 %v2495_v50  ;;  %450 = vmatpush1.msra.mxu1 %v2343_v5 }
  0x44   :  { %371 = vmatpush1.msra.mxu0 %v2440_v60  ;;  %452 = vmatprep.subr.mxu1 %v2345_v6  ;;  %p2268_p4 = por %p2267_p3, %p2266_p2 }
  0x45   :  { %374 = vmatprep.subr.mxu0 %v2447_v63  ;;  %410 = vmatprep.mubr.f32.mxu0 %v2294_v0 }
  0x46   :  { %377 = vmatpush1.msra.mxu0 %v2450_v1  ;;  %454 = vmatpush1.msra.mxu1 %v2347_v10  ;;  %p2269_p5 = pnand %p2268_p4, %p2262_p1 }
  0x47   :  { %314 = vmatprep.mubr.f32.mxu1 %v2294_v0  ;;  %413 = vmatmul.mubr.f32.vlgmr.msra.gmra.mxu0 %v2418_v47 }
  0x48   :  { %456 = vmatprep.subr.mxu1 %v2349_v11  ;;  %545 = vmatprep.subr.mxu0 %v205_v28  ;;  %v2540_v28 = vand.u32 4294901760, %v73_v24 }
  0x49   :  { %316 = vmatmul.mubr.f32.gmra.mxu1 %v2470_v22  ;;  %549 = vmatpush1.msra.mxu0 %v211_v32  ;;  %v2549_v32 = vsub.f32 %v76_v19, %v2532_v26 }
  0x4a   :  { %458 = vmatpush1.msra.mxu1 %v2351_v12  ;;  %553 = vmatprep.subr.mxu0 %v217_v33  ;;  %v2554_v33 = vand.u32 4294901760, %v70_v30 }
  0x4b   :  { %460 = vmatprep.subr.mxu1 %v2354_v16  ;;  %418 = vmatprep.mubr.f32.mxu0 %v2294_v0 }
  0x4c   :  { %462 = vmatpush1.msra.mxu1 %v2356_v17  ;;  %557 = vmatpush1.msra.mxu0 %v223_v37  ;;  %v2564_v37 = vand.u32 4294901760, %v67_v31 }
  0x4d   :  { %421 = vmatmul.mubr.f32.gmra.mxu0 %v2482_v44  ;;  %464 = vmatprep.subr.mxu1 %v2358_v18 }
  0x4e   :  { %561 = vmatprep.subr.mxu0 %v229_v38  ;;  %466 = vmatpush1.msra.mxu1 %v2364_v23  ;;  %v2573_v38 = vand.u32 4294901760, %v64_v35 }
  0x4f   :  { %565 = vmatpush1.msra.mxu0 %v235_v42  ;;  %468 = vmatprep.subr.mxu1 %v2369_v25  ;;  %v2576_v42 = vsub.f32 %v70_v30, %v2554_v33 }
  0x50   :  { %569 = vmatprep.subr.mxu0 %v241_v51  ;;  %470 = vmatpush1.msra.mxu1 %v2376_v29 }
  0x51   :  { %503 = vmatprep.mubr.f32.mxu1 %v2294_v0  ;;  %573 = vmatpush1.msra.mxu0 %v247_v62 }
  0x52   :  { %507 = vmatmul.mubr.f32.vlgmr.msra.gmra.mxu1 %v2427_v54  ;;  %577 = vmatprep.subr.mxu0 %v253_v3 }
  0x53   :  { %658 = vmatprep.subr.mxu1 %v2341_v4  ;;  %581 = vmatpush1.msra.mxu0 %v259_v7  ;;  %v2559_v4 = vsub.f32 %v73_v24, %v2540_v28  ;;  %v2692_v24 = vld [vmem:[#allocation7] sm:$0x7] }
  0x54   :  { %660 = vmatpush1.msra.mxu1 %v2343_v5  ;;  %585 = vmatprep.subr.mxu0 %v265_v14  ;;  %v2569_v5 = vand.u32 4294901760, %v2549_v32  ;;  %v1284_v14 = vlaneseq }
  0x55   :  { %662 = vmatprep.subr.mxu1 %v2345_v6  ;;  %512 = vmatprep.mubr.f32.mxu1 %v2294_v0  ;;  %v61_v6 = vld [vmem:[#allocation5 + $0x10] sm:$0xff] }
  0x56   :  { %589 = vmatpush1.msra.mxu0 %v271_v15  ;;  %622 = vmatprep.mubr.f32.mxu0 %v2294_v0  ;;  %v2585_v43 = vand.u32 4294901760, %v61_v6  ;;  %v843_v51 = vsub.f32 %v2549_v32, %v2569_v5  ;;  %v2683_v21 = vshrl.u32 %v1284_v14, 7 }
  0x57   :  { %664 = vmatpush1.msra.mxu1 %v2347_v10  ;;  %624 = vmatmul.mubr.f32.vlgmr.msra.gmra.mxu0 %v2397_v39  ;;  %v2581_v10 = vand.u32 4294901760, %v2559_v4 }
  0x58   :  { %516 = vmatmul.mubr.f32.gmra.mxu1 %v2487_v48  ;;  %666 = vmatprep.subr.mxu1 %v2349_v11  ;;  %v862_v11 = vsub.f32 %v67_v31, %v2564_v37  ;;  %v844_v55 = vand.u32 4294901760, %v843_v51  ;;  %v1286_v41 = vsub.s32 0, %v2683_v21 }
  0x59   :  { %2048 = vmatprep.subr.mxu0 %v2532_v26  ;;  %668 = vmatpush1.msra.mxu1 %v2351_v12  ;;  %v2595_v12 = vand.u32 4294901760, %v2576_v42  ;;  %v850_v52 = vsub.f32 %v2559_v4, %v2581_v10 }
  0x5a   :  { %2049 = vmatpush3.msra.mxu0 %v2532_v26  ;;  %670 = vmatprep.subr.mxu1 %v2354_v16  ;;  %v869_v16 = vsub.f32 %v64_v35, %v2573_v38  ;;  %v2604_v53 = vand.u32 4294901760, %v862_v11  ;;  %v1287_v30 = vrot.slane %v2689_v45, %v1286_v41 }
  0x5b   :  { %2050 = vmatprep.subr.mxu0 %v2540_v28  ;;  %629 = vmatprep.mubr.f32.mxu0 %v2294_v0 }
  0x5c   :  { %672 = vmatpush1.msra.mxu1 %v2356_v17  ;;  %2051 = vmatpush3.msra.mxu0 %v2540_v28  ;;  %v876_v17 = vsub.f32 %v61_v6, %v2585_v43  ;;  %v2613_v56 = vand.u32 4294901760, %v869_v16 }
  0x5d   :  { %631 = vmatmul.mubr.f32.gmra.mxu0 %v2470_v22  ;;  %674 = vmatprep.subr.mxu1 %v2358_v18  ;;  %v857_v18 = vsub.f32 %v2576_v42, %v2595_v12 }
  0x5e   :  { %2052 = vmatprep.subr.mxu0 %v2554_v33  ;;  %676 = vmatpush1.msra.mxu1 %v2364_v23  ;;  %v851_v23 = vand.u32 4294901760, %v850_v52  ;;  %v2620_v57 = vand.u32 4294901760, %v876_v17  ;;  %v871_v58 = vsub.f32 %v869_v16, %v2613_v56 }
  0x5f   :  { %2053 = vmatpush3.msra.mxu0 %v2554_v33  ;;  %678 = vmatprep.subr.mxu1 %v2369_v25  ;;  %v864_v25 = vsub.f32 %v862_v11, %v2604_v53 }
  0x60   :  { %2054 = vmatprep.subr.mxu0 %v2564_v37  ;;  %680 = vmatpush1.msra.mxu1 %v2376_v29  ;;  %v858_v29 = vand.u32 4294901760, %v857_v18  ;;  %v878_v60 = vsub.f32 %v876_v17, %v2620_v57  ;;  %v872_v61 = vand.u32 4294901760, %v871_v58 }
  0x61   :  { %713 = vmatprep.mubr.f32.mxu1 %v2294_v0  ;;  %2055 = vmatpush3.msra.mxu0 %v2564_v37  ;;  %v865_v59 = vand.u32 4294901760, %v864_v25 }
  0x62   :  { %715 = vmatmul.mubr.f32.vlgmr.msra.gmra.mxu1 %v2397_v39  ;;  %2056 = vmatprep.subr.mxu0 %v2573_v38 }
  0x63   :  { %2063 = vmatprep.subr.mxu1 %v844_v55  ;;  %2057 = vmatpush3.msra.mxu0 %v2573_v38 }
  0x64   :  { %2064 = vmatpush3.msra.mxu1 %v844_v55  ;;  %2058 = vmatprep.subr.mxu0 %v2585_v43 }
  0x65   :  { %2065 = vmatprep.subr.mxu1 %v851_v23  ;;  %720 = vmatprep.mubr.f32.mxu1 %v2294_v0  ;;  %v879_v0 = vand.u32 4294901760, %v878_v60 }
  0x66   :  { %2059 = vmatpush3.msra.mxu0 %v2585_v43  ;;  %2066 = vmatpush3.msra.mxu1 %v851_v23 }
  0x67   :  { %722 = vmatmul.mubr.f32.gmra.mxu1 %v2470_v22  ;;  %2060 = vmatprep.mubr.f32.mxu0 %v2457_v9 }
  0x68   :  { %2067 = vmatprep.subr.mxu1 %v858_v29  ;;  %2078 = vmatprep.subr.mxu0 %v2549_v32 }
  0x69   :  { %2061 = vmatmul.mubr.f32.vlgmr.msra.gmra.mxu0 %v2495_v50  ;;  %2068 = vmatpush3.msra.mxu1 %v858_v29  ;;  %v1290_v50 = vsub.s32 1, %v2683_v21 }
  0x6a   :  { %2079 = vmatpush3.msra.mxu0 %v2549_v32  ;;  %2069 = vmatprep.subr.mxu1 %v865_v59 }
  0x6b   :  { %2080 = vmatprep.subr.mxu0 %v2559_v4  ;;  %2070 = vmatpush3.msra.mxu1 %v865_v59  ;;  %v1291_v6 = vrot.slane %v2689_v45, %v1290_v50 }
  0x6c   :  { %2081 = vmatpush3.msra.mxu0 %v2559_v4  ;;  %2071 = vmatprep.subr.mxu1 %v872_v61 }
  0x6d   :  { %2082 = vmatprep.subr.mxu0 %v2576_v42  ;;  %2072 = vmatpush3.msra.mxu1 %v872_v61 }
  0x6e   :  { %2083 = vmatpush3.msra.mxu0 %v2576_v42  ;;  %2073 = vmatprep.subr.mxu1 %v879_v0 }
  0x6f   :  { %2084 = vmatprep.subr.mxu0 %v862_v11  ;;  %2074 = vmatpush3.msra.mxu1 %v879_v0 }
  0x70   :  { %2075 = vmatprep.mubr.f32.mxu1 %v2397_v39  ;;  %2085 = vmatpush3.msra.mxu0 %v862_v11 }
  0x71   :  { %2076 = vmatmul.mubr.f32.vlgmr.msra.gmra.mxu1 %v2470_v22  ;;  %2086 = vmatprep.subr.mxu0 %v869_v16 }
  0x72   :  { %2093 = vmatprep.subr.mxu1 %v2532_v26  ;;  %2087 = vmatpush3.msra.mxu0 %v869_v16 }
  0x73   :  { %2094 = vmatpush3.msra.mxu1 %v2532_v26  ;;  %2088 = vmatprep.subr.mxu0 %v876_v17 }
  0x74   :  { %2095 = vmatprep.subr.mxu1 %v2540_v28  ;;  %2089 = vmatpush3.msra.mxu0 %v876_v17 }
  0x75   :  { %2090 = vmatprep.mubr.f32.mxu0 %v2418_v47  ;;  %2096 = vmatpush3.msra.mxu1 %v2540_v28 }
  0x76   :  { %2091 = vmatmul.mubr.f32.vlgmr.msra.gmra.mxu0 %v2482_v44  ;;  %2097 = vmatprep.subr.mxu1 %v2554_v33 }
  0x77   :  { %2108 = vmatprep.subr.mxu0 %v2569_v5  ;;  %2098 = vmatpush3.msra.mxu1 %v2554_v33 }
  0x78   :  { %2109 = vmatpush3.msra.mxu0 %v2569_v5  ;;  %2099 = vmatprep.subr.mxu1 %v2564_v37  ;;  %v1310_v5 = vrot.slane %v2692_v24, %v1286_v41 }
  0x79   :  { %2110 = vmatprep.subr.mxu0 %v2581_v10  ;;  %2100 = vmatpush3.msra.mxu1 %v2564_v37 }
  0x7a   :  { %2111 = vmatpush3.msra.mxu0 %v2581_v10  ;;  %2101 = vmatprep.subr.mxu1 %v2573_v38 }
  0x7b   :  { %2112 = vmatprep.subr.mxu0 %v2595_v12  ;;  %2102 = vmatpush3.msra.mxu1 %v2573_v38 }
  0x7c   :  { %2113 = vmatpush3.msra.mxu0 %v2595_v12  ;;  %2103 = vmatprep.subr.mxu1 %v2585_v43  ;;  %v1314_v12 = vrot.slane %v2692_v24, %v1290_v50 }
  0x7d   :  { %2114 = vmatprep.subr.mxu0 %v2604_v53  ;;  %2104 = vmatpush3.msra.mxu1 %v2585_v43 }
  0x7e   :  { %2105 = vmatprep.mubr.f32.mxu1 %v2427_v54  ;;  %2115 = vmatpush3.msra.mxu0 %v2604_v53 }
  0x7f   :  { %2106 = vmatmul.mubr.f32.vlgmr.msra.gmra.mxu1 %v2487_v48  ;;  %2116 = vmatprep.subr.mxu0 %v2613_v56 }
  0x80   :  { %2123 = vmatprep.subr.mxu1 %v2532_v26  ;;  %2117 = vmatpush3.msra.mxu0 %v2613_v56 }
  0x81   :  { %2124 = vmatpush3.msra.mxu1 %v2532_v26  ;;  %2118 = vmatprep.subr.mxu0 %v2620_v57 }
  0x82   :  { %2125 = vmatprep.subr.mxu1 %v2540_v28  ;;  %2119 = vmatpush3.msra.mxu0 %v2620_v57 }
  0x83   :  { %2120 = vmatprep.mubr.f32.mxu0 %v2397_v39  ;;  %2126 = vmatpush3.msra.mxu1 %v2540_v28 }
  0x84   :  { %2121 = vmatmul.mubr.f32.vlgmr.msra.gmra.mxu0 %v2470_v22  ;;  %2127 = vmatprep.subr.mxu1 %v2554_v33 }
  0x85   :  { %2128 = vmatpush3.msra.mxu1 %v2554_v33  ;;  %2135 = vmatprep.mubr.f32.mxu1 %v2397_v39 }
  0x86   :  { %2129 = vmatprep.subr.mxu1 %v2564_v37 }
  0x87   :  { %2130 = vmatpush3.msra.mxu1 %v2564_v37 }
  0x88   :  { %2131 = vmatprep.subr.mxu1 %v2573_v38 }
  0x89   :  { %2132 = vmatpush3.msra.mxu1 %v2573_v38 }
  0x8a   :  { %2133 = vmatprep.subr.mxu1 %v2585_v43 }
  0x8b   :  { %2134 = vmatpush3.msra.mxu1 %v2585_v43 }
  0x8c   :  { %2136 = vmatmul.mubr.f32.vlgmr.msra.gmra.mxu1 %v2470_v22 }
  0xfa   :  { %v167_v47 = vpop.f32.mrf.mxu0 }
  0xfc   :  { %v169_v54 = vpop.f32.mrf.mxu0 }
 0x101   :  { %v310_v63 = vpop.f32.mrf.mxu1 }
 0x102   :  { %v311_v27 = vadd.f32 %v310_v63, %v167_v47 }
 0x103   :  { %v178_v62 = vpop.f32.mrf.mxu0  ;;  %v312_v39 = vpop.f32.mrf.mxu1 }
 0x104   :  { %v313_v36 = vadd.f32 %v312_v39, %v169_v54 }
 0x105   :  { %v180_v1 = vpop.f32.mrf.mxu0 }
 0x107   :  { %v414_v2 = vpop.f32.mrf.mxu0 }
 0x108   :  { %v415_v40 = vadd.f32 %v414_v2, %v311_v27 }
 0x109   :  { %v317_v3 = vpop.f32.mrf.mxu1  ;;  %v416_v7 = vpop.f32.mrf.mxu0 }
 0x10a   :  { %v318_v44 = vadd.f32 %v317_v3, %v178_v62  ;;  %v417_v46 = vadd.f32 %v416_v7, %v313_v36 }
 0x10b   :  { %v319_v8 = vpop.f32.mrf.mxu1 }
 0x10c   :  { %v320_v31 = vadd.f32 %v319_v8, %v180_v1 }
 0x10d   :  { %v422_v13 = vpop.f32.mrf.mxu0 }
 0x10e   :  { %v423_v32 = vadd.f32 %v422_v13, %v318_v44 }
 0x10f   :  { %v424_v20 = vpop.f32.mrf.mxu0 }
 0x110   :  { %v425_v11 = vadd.f32 %v424_v20, %v320_v31  ;;  %v2299_v31 = vmov 920167782  }
 0x112   :  { %v508_v9 = vpop.f32.mrf.mxu1 }
 0x113   :  { %v509_v48 = vadd.f32 %v508_v9, %v415_v40 }
 0x114   :  { %v510_v15 = vpop.f32.mrf.mxu1 }
 0x115   :  { %v511_v26 = vadd.f32 %v510_v15, %v417_v46  ;;  %v2295_v46 = vmov 683565275  }
 0x117   :  { %v625_v34 = vpop.f32.mrf.mxu0 }
 0x118   :  { %v517_v22 = vpop.f32.mrf.mxu1  ;;  %v626_v28 = vadd.f32 %v625_v34, %v509_v48  ;;  %v1294_v34 = vsub.s32 2, %v2683_v21 }
 0x119   :  { %v627_v49 = vpop.f32.mrf.mxu0  ;;  %v518_v38 = vadd.f32 %v517_v22, %v423_v32 }
 0x11a   :  { %v519_v19 = vpop.f32.mrf.mxu1  ;;  %v628_v35 = vadd.f32 %v627_v49, %v511_v26  ;;  %v2296_v49 = vmov 2475754826  }
 0x11b   :  { %v520_v55 = vadd.f32 %v519_v19, %v425_v11  ;;  %v2297_v19 = vmov 2131351028  }
 0x11d   :  { %v632_v4 = vpop.f32.mrf.mxu0 }
 0x11e   :  { %v633_v51 = vadd.f32 %v632_v4, %v518_v38 }
 0x11f   :  { %v634_v16 = vpop.f32.mrf.mxu0 }
 0x120   :  { %v635_v57 = vadd.f32 %v634_v16, %v520_v55 }
 0x122   :  { %v716_v33 = vpop.f32.mrf.mxu1 }
 0x123   :  { %v717_v37 = vadd.f32 %v716_v33, %v626_v28  ;;  %v2298_v28 = vmov 2102212464  }
 0x124   :  { %v718_v42 = vpop.f32.mrf.mxu1 }
 0x125   :  { %v1299_v10 = vmul.f32 %v1287_v30, %v717_v37  ;;  %v719_v43 = vadd.f32 %v718_v42, %v628_v35 }
 0x127   :  { %v2698_v52 = vadd.f32 %v1310_v5, %v1299_v10  ;;  %v1300_v53 = vmul.f32 %v1291_v6, %v719_v43  ;;  %v723_v17 = vpop.f32.mrf.mxu1 }
 0x128   :  { %v724_v18 = vadd.f32 %v723_v17, %v633_v51 }
 0x129   :  { %v1328_v56 = vand.u32 2147483647, %v2698_v52  ;;  %v1331_v23 = vand.u32 2139095040, %v2698_v52  ;;  %v725_v25 = vpop.f32.mrf.mxu1  ;;  %v2702_v29 = vadd.f32 %v1314_v12, %v1300_v53  ;;  %vm1330_vm15 = vcmp.lt.s32.totalorder %v2698_v52, 0 }
 0x12a   :  { %v1302_v58 = vmul.f32 %v1287_v30, %v724_v18  ;;  %v726_v47 = vadd.f32 %v725_v25, %v635_v57 }
 0x12b   :  { %v1332_v59 = vshrl.u32 %v1331_v23, 23  ;;  %v1335_v60 = vand.u32 8388607, %v1328_v56  ;;  %v1432_v61 = vand.u32 2147483647, %v2702_v29  ;;  %v1435_v0 = vand.u32 2139095040, %v2702_v29 }
 0x12c   :  { %v2708_v62 = vadd.f32 %v1310_v5, %v1302_v58  ;;  %v1303_v9 = vmul.f32 %v1291_v6, %v726_v47  ;;  %v2300_v6 = vmov 1326507024   ;;  %vm2795_vm14 = vcmp.le.f32.partialorder %v1328_v56, 0.7853982 }
 0x12d   :  { %v1976_v54 = vadd.s32 4294967169, %v1332_v59  ;;  %v1436_v63 = vshrl.u32 %v1435_v0, 23  ;;  %v1439_v1 = vand.u32 8388607, %v1432_v61  ;;  %v1336_v39 = vor.u32 8388608, %v1335_v60 }
 0x12e   :  { %v1643_v8 = vand.u32 2139095040, %v2708_v62  ;;  %v1640_v36 = vand.u32 2147483647, %v2708_v62  ;;  %v2719_v41 = vadd.f32 %v1314_v12, %v1303_v9 }
 0x12f   :  { %v1338_v2 = vadd.s32 1, %v1976_v54  ;;  %v1980_v3 = vadd.s32 4294967169, %v1436_v63  ;;  %v1440_v7 = vor.u32 8388608, %v1439_v1  ;;  %v2713_v27 = vshll.u32 %v1336_v39, 8 }
 0x130   :  { %v1644_v40 = vshrl.u32 %v1643_v8, 23 }
 0x131   :  { %vm1339_vm1 = vcmp.gt.s32.totalorder %v1338_v2, 0  ;;  %v1442_v14 = vadd.s32 1, %v1980_v3  ;;  %v2716_v22 = vshll.u32 %v1440_v7, 8 }
 0x132   :  { %v1340_v13 = vsel %vm1339_vm1, %v1338_v2, 0  ;;  %v1988_v47 = vadd.s32 4294967169, %v1644_v40 }
 0x133   :  { %v1341_v15 = vshrl.u32 %v1340_v13, 5  ;;  %v1342_v20 = vand.u32 31, %v1340_v13  ;;  %vm1443_vm2 = vcmp.gt.s32.totalorder %v1442_v14, 0 }
 0x134   :  { %v1444_v11 = vsel %vm1443_vm2, %v1442_v14, 0 }
 0x135   :  { %v1343_v44 = vsub.s32 32, %v1342_v20  ;;  %v1345_v48 = vshll.u32 %v2295_v46, %v1342_v20  ;;  %v1348_v50 = vshll.u32 %v2296_v49, %v1342_v20  ;;  %v1351_v26 = vshll.u32 %v2297_v19, %v1342_v20 }
 0x136   :  { %v1354_v30 = vshll.u32 %v2298_v28, %v1342_v20  ;;  %v1357_v32 = vshll.u32 %v2299_v31, %v1342_v20  ;;  %vm1360_vm3 = vcmp.lt.s32.totalorder %v1341_v15, 1  ;;  %vm1361_vm4 = vcmp.lt.s32.totalorder %v1341_v15, 2 }
 0x137   :  { %v1346_v33 = vshrl.u32 %v2296_v49, %v1343_v44  ;;  %v1349_v35 = vshrl.u32 %v2297_v19, %v1343_v44  ;;  %v1352_v4 = vshrl.u32 %v2298_v28, %v1343_v44  ;;  %v1344_v37 = vshrl.u32 %v2295_v46, %v1343_v44 }
 0x138   :  { %v1355_v5 = vshrl.u32 %v2299_v31, %v1343_v44  ;;  %v1358_v38 = vshrl.u32 %v2300_v6, %v1343_v44  ;;  %vm1362_vm5 = vcmp.lt.s32.totalorder %v1341_v15, 3  ;;  %vm1363_vm6 = vcmp.lt.s32.totalorder %v1341_v15, 4 }
 0x139   :  { %v1347_v42 = vor.u32 %v1346_v33, %v1345_v48  ;;  %v1350_v10 = vor.u32 %v1349_v35, %v1348_v50  ;;  %v1353_v43 = vor.u32 %v1352_v4, %v1351_v26  ;;  %v1446_v16 = vand.u32 31, %v1444_v11 }
 0x13a   :  { %v1356_v51 = vor.u32 %v1355_v5, %v1354_v30  ;;  %v1359_v12 = vor.u32 %v1358_v38, %v1357_v32  ;;  %v1445_v1 = vshrl.u32 %v1444_v11, 5 }
 0x13b   :  { %v1364_v53 = vsel %vm1360_vm3, %v1344_v37, %v1347_v42  ;;  %v1365_v17 = vsel %vm1363_vm6, %v1353_v43, 2102212464  ;;  %v1368_v55 = vsel %vm1360_vm3, %v1347_v42, %v1350_v10  ;;  %v1372_v18 = vsel %vm1360_vm3, %v1350_v10, %v1353_v43 }
 0x13c   :  { %v1366_v23 = vsel %vm1362_vm5, %v1350_v10, %v1365_v17  ;;  %v1369_v25 = vsel %vm1363_vm6, %v1356_v51, 920167782  ;;  %v1373_v57 = vsel %vm1363_vm6, %v1359_v12, 1326507024  ;;  %v1447_v58 = vsub.s32 32, %v1446_v16 }
 0x13d   :  { %v1367_v59 = vsel %vm1361_vm4, %v1364_v53, %v1366_v23  ;;  %v1370_v60 = vsel %vm1362_vm5, %v1353_v43, %v1369_v25  ;;  %v1374_v0 = vsel %vm1362_vm5, %v1356_v51, %v1373_v57  ;;  %v1449_v39 = vshll.u32 %v2295_v46, %v1446_v16 }
 0x13e   :  { %v1371_v54 = vsel %vm1361_vm4, %v1368_v55, %v1370_v60  ;;  %v1375_v63 = vsel %vm1361_vm4, %v1372_v18, %v1374_v0  ;;  %v1383_v9 = vmul.u32 %v2713_v27, %v1367_v59  ;;  %v1450_v13 = vshrl.u32 %v2296_v49, %v1447_v58 }
 0x13f   :  { %v2744_v2 = vmul.u32.u64.low %v2713_v27, %v1375_v63  ;;  %v2745_v3 = vmul.u32.u64.high %v2713_v27, %v1375_v63, %v2744_v2  ;;  %v2748_v7 = vmul.u32.u64.low %v2713_v27, %v1371_v54  ;;  %v2749_v8 = vmul.u32.u64.high %v2713_v27, %v1371_v54, %v2748_v7 }
 0x140   :  { %v1452_v14 = vshll.u32 %v2296_v49, %v1446_v16  ;;  %v1453_v15 = vshrl.u32 %v2297_v19, %v1447_v58  ;;  %v1455_v20 = vshll.u32 %v2297_v19, %v1446_v16  ;;  %v1456_v40 = vshrl.u32 %v2298_v28, %v1447_v58 }
 0x141   :  { %v1458_v44 = vshll.u32 %v2298_v28, %v1446_v16  ;;  %v1459_v48 = vshrl.u32 %v2299_v31, %v1447_v58  ;;  %v1451_v50 = vor.u32 %v1450_v13, %v1449_v39  ;;  %v1461_v30 = vshll.u32 %v2299_v31, %v1446_v16 }
 0x142   :  { %v1454_v26 = vor.u32 %v1453_v15, %v1452_v14  ;;  %v1462_v27 = vshrl.u32 %v2300_v6, %v1447_v58  ;;  %vm1385_vm7 = vc.u32 %v2745_v3, %v2748_v7  ;;  %v1386_v32 = vadd.s32 1, %v2749_v8 }
 0x143   :  { %v1448_v33 = vshrl.u32 %v2295_v46, %v1447_v58  ;;  %v1457_v35 = vor.u32 %v1456_v40, %v1455_v20  ;;  %v1460_v4 = vor.u32 %v1459_v48, %v1458_v44  ;;  %vm1464_vm8 = vcmp.lt.s32.totalorder %v1445_v1, 1 }
 0x144   :  { %v1463_v37 = vor.u32 %v1462_v27, %v1461_v30  ;;  %vm1465_vm9 = vcmp.lt.s32.totalorder %v1445_v1, 2  ;;  %v1387_v5 = vsel %vm1385_vm7, %v1386_v32, %v2749_v8  ;;  %vm1466_vm10 = vcmp.lt.s32.totalorder %v1445_v1, 3 }
 0x145   :  { %vm1467_vm11 = vcmp.lt.s32.totalorder %v1445_v1, 4  ;;  %v1472_v38 = vsel %vm1464_vm8, %v1451_v50, %v1454_v26  ;;  %v1388_v42 = vadd.s32 %v1387_v5, %v1383_v9  ;;  %v1476_v11 = vsel %vm1464_vm8, %v1454_v26, %v1457_v35 }
 0x146   :  { %v1469_v10 = vsel %vm1467_vm11, %v1457_v35, 2102212464  ;;  %v1473_v43 = vsel %vm1467_vm11, %v1460_v4, 920167782  ;;  %v1468_v51 = vsel %vm1464_vm8, %v1448_v33, %v1451_v50  ;;  %v1477_v16 = vsel %vm1467_vm11, %v1463_v37, 1326507024 }
 0x147   :  { %v1474_v12 = vsel %vm1466_vm10, %v1457_v35, %v1473_v43  ;;  %v1650_v53 = vadd.s32 1, %v1988_v47  ;;  %v1389_v17 = vadd.s32 536870912, %v1388_v42  ;;  %v1470_v55 = vsel %vm1466_vm10, %v1454_v26, %v1469_v10 }
 0x148   :  { %v1475_v18 = vsel %vm1465_vm9, %v1472_v38, %v1474_v12  ;;  %v1478_v23 = vsel %vm1466_vm10, %v1460_v4, %v1477_v16  ;;  %v1647_v59 = vand.u32 8388607, %v1640_v36  ;;  %v1471_v47 = vsel %vm1465_vm9, %v1468_v51, %v1470_v55 }
 0x149   :  { %v1479_v25 = vsel %vm1465_vm9, %v1476_v11, %v1478_v23  ;;  %v2770_v57 = vmul.u32.u64.low %v2716_v22, %v1475_v18  ;;  %v2771_v58 = vmul.u32.u64.high %v2716_v22, %v1475_v18, %v2770_v57  ;;  %v1390_v60 = vshrl.u32 %v1389_v17, 30 }
 0x14a   :  { %v2777_v0 = vmul.u32.u64.low %v2716_v22, %v1479_v25  ;;  %v2778_v54 = vmul.u32.u64.high %v2716_v22, %v1479_v25, %v2777_v0  ;;  %vm1651_vm12 = vcmp.gt.s32.totalorder %v1650_v53, 0  ;;  %v1747_v8 = vand.u32 2139095040, %v2719_v41 }
 0x14b   :  { %v1652_v63 = vsel %vm1651_vm12, %v1650_v53, 0  ;;  %v1391_v39 = vshll.u32 %v1390_v60, 30  ;;  %v1490_v9 = vadd.s32 1, %v2771_v58  ;;  %v1648_v13 = vor.u32 8388608, %v1647_v59 }
 0x14c   :  { %v1654_v2 = vand.u32 31, %v1652_v63  ;;  %v2786_v14 = vrot.slane %v2689_v45, %v1294_v34  ;;  %v1414_v20 = vsub.s32 4, %v1390_v60  ;;  %v1487_v40 = vmul.u32 %v2716_v22, %v1471_v47 }
 0x14d   :  { %v2788_v15 = vsub.s32 %v1388_v42, %v1391_v39  ;;  %vm1489_vm13 = vc.u32 %v2778_v54, %v2770_v57  ;;  %v1384_v48 = vadd.s32 %v2748_v7, %v2745_v3  ;;  %v1748_v26 = vshrl.u32 %v1747_v8, 23 }
 0x14e   :  { %v1491_v44 = vsel %vm1489_vm13, %v1490_v9, %v2771_v58  ;;  %v1655_v45 = vsub.s32 32, %v1654_v2  ;;  %v2804_v30 = vshrl.u32 %v1652_v63, 5  ;;  %v2808_v32 = vshll.u32 %v1648_v13, 8 }
 0x14f   :  { %v1394_v50 = vsub.s32 0, %v2788_v15  ;;  %v1492_v22 = vadd.s32 %v1491_v44, %v1487_v40  ;;  %v1415_v35 = vsel %vm1330_vm15, %v1414_v20, %v1390_v60  ;;  %v1657_v7 = vshll.u32 %v2295_v46, %v1654_v2 }
 0x150   :  { %v1658_v27 = vshrl.u32 %v2296_v49, %v1655_v45  ;;  %v1661_v56 = vshrl.u32 %v2297_v19, %v1655_v45  ;;  %v1664_v3 = vshrl.u32 %v2298_v28, %v1655_v45  ;;  %v1660_v37 = vshll.u32 %v2296_v49, %v1654_v2 }
 0x151   :  { %v1977_v33 = vmin.u32 %v1394_v50, %v2788_v15  ;;  %v1493_v4 = vadd.s32 536870912, %v1492_v22  ;;  %v1666_v5 = vshll.u32 %v2298_v28, %v1654_v2  ;;  %v1667_v38 = vshrl.u32 %v2299_v31, %v1655_v45 }
 0x152   :  { %v1663_v43 = vshll.u32 %v2297_v19, %v1654_v2  ;;  %v1992_v11 = vadd.s32 4294967169, %v1748_v26  ;;  %v1659_v51 = vor.u32 %v1658_v27, %v1657_v7  ;;  %v1662_v12 = vor.u32 %v1661_v56, %v1660_v37 }
 0x153   :  { %v1396_v42 = vclz %v1977_v33  ;;  %v2818_v10 = vshrl.u32 %v1493_v4, 30  ;;  %v1668_v16 = vor.u32 %v1667_v38, %v1666_v5  ;;  %v1670_v53 = vshrl.u32 %v2300_v6, %v1655_v45 }
 0x154   :  { %v1417_v55 = vsel %vm2795_vm14, 0, %v1415_v35  ;;  %v1665_v23 = vor.u32 %v1664_v3, %v1663_v43  ;;  %v1656_v25 = vshrl.u32 %v2295_v46, %v1655_v45  ;;  %v1669_v58 = vshll.u32 %v2299_v31, %v1654_v2 }
 0x155   :  { %v1978_v17 = vadd.s32 4294967294, %v1396_v42  ;;  %v1495_v18 = vshll.u32 %v2818_v10, 30  ;;  %vm1672_vm0 = vcmp.lt.s32.totalorder %v2804_v30, 1  ;;  %vm1673_vm1 = vcmp.lt.s32.totalorder %v2804_v30, 2 }
 0x156   :  { %vm1674_vm3 = vcmp.lt.s32.totalorder %v2804_v30, 3  ;;  %vm1675_vm4 = vcmp.lt.s32.totalorder %v2804_v30, 4  ;;  %v1671_v0 = vor.u32 %v1670_v53, %v1669_v58  ;;  %v1680_v47 = vsel %vm1672_vm0, %v1659_v51, %v1662_v12 }
 0x157   :  { %vm1979_vm2 = vcmp.lt.s32.totalorder %v1978_v17, 0  ;;  %v2829_v59 = vsub.s32 %v1492_v22, %v1495_v18  ;;  %v1681_v63 = vsel %vm1675_vm4, %v1668_v16, 920167782  ;;  %v1677_v9 = vsel %vm1675_vm4, %v1665_v23, 2102212464 }
 0x158   :  { %v1399_v60 = vsel %vm1979_vm2, 0, %v1978_v17  ;;  %v1676_v20 = vsel %vm1672_vm0, %v1656_v25, %v1659_v51  ;;  %v1682_v40 = vsel %vm1674_vm3, %v1665_v23, %v1681_v63  ;;  %v1684_v44 = vsel %vm1672_vm0, %v1662_v12, %v1665_v23 }
 0x159   :  { %v1400_v39 = vsub.s32 32, %v1399_v60  ;;  %v1404_v2 = vsub.s32 4294967266, %v1399_v60  ;;  %v1498_v8 = vsub.s32 0, %v2829_v59  ;;  %v1401_v13 = vshll.u32 %v2788_v15, %v1399_v60 }
 0x15a   :  { %v1683_v26 = vsel %vm1673_vm1, %v1680_v47, %v1682_v40  ;;  %v1678_v27 = vsel %vm1674_vm3, %v1662_v12, %v1677_v9  ;;  %v1685_v15 = vsel %vm1675_vm4, %v1671_v0, 1326507024  ;;  %v1744_v37 = vand.u32 2147483647, %v2719_v41 }
 0x15b   :  { %v1402_v45 = vshrl.u32 %v1384_v48, %v1400_v39  ;;  %v1405_v50 = vadd.s32 127, %v1404_v2  ;;  %v1981_v22 = vmin.u32 %v1498_v8, %v2829_v59  ;;  %v1686_v3 = vsel %vm1674_vm3, %v1668_v16, %v1685_v15 }
 0x15c   :  { %v2855_v56 = vmul.u32.u64.low %v2808_v32, %v1683_v26  ;;  %v2856_v33 = vmul.u32.u64.high %v2808_v32, %v1683_v26, %v2855_v56  ;;  %v1687_v7 = vsel %vm1673_vm1, %v1684_v44, %v1686_v3  ;;  %v1754_v5 = vadd.s32 1, %v1992_v11 }
 0x15d   :  { %v1403_v35 = vor.u32 %v1402_v45, %v1401_v13  ;;  %v1406_v4 = vshll.u32 %v1405_v50, 23  ;;  %v1500_v48 = vclz %v1981_v22  ;;  %v2867_v38 = vrot.slane %v2692_v24, %v1294_v34 }
 0x15e   :  { %v1421_v43 = vadd.s32 3, %v1417_v55  ;;  %v1679_v12 = vsel %vm1673_vm1, %v1676_v20, %v1678_v27  ;;  %v2872_v16 = vmul.u32.u64.low %v2808_v32, %v1687_v7  ;;  %v2873_v17 = vmul.u32.u64.high %v2808_v32, %v1687_v7, %v2872_v16  ;;  %v2077_v27 = vpop.f32.mrf.mxu1 }
 0x15f   :  { %v1407_v42 = vor.u32 4788187, %v1406_v4  ;;  %v1982_v51 = vadd.s32 4294967294, %v1500_v48  ;;  %v1410_v53 = vcvt.s32.f32 %v1403_v35  ;;  %vm1755_vm5 = vcmp.gt.s32.totalorder %v1754_v5, 0 }
 0x160   :  { %v1698_v11 = vadd.s32 1, %v2856_v33  ;;  %v1756_v21 = vsel %vm1755_vm5, %v1754_v5, 0  ;;  %v1518_v24 = vsub.s32 4, %v2818_v10  ;;  %v1751_v34 = vand.u32 8388607, %v1744_v37  ;;  %v916_v16 = vpop.f32.mrf.mxu1 }
 0x161   :  { %v1408_v18 = vand.u32 2147483647, %v1407_v42  ;;  %vm1983_vm6 = vcmp.lt.s32.totalorder %v1982_v51, 0  ;;  %v1758_v55 = vand.u32 31, %v1756_v21  ;;  %vm1434_vm7 = vcmp.lt.s32.totalorder %v2702_v29, 0 }
 0x162   :  { %v1503_v23 = vsel %vm1983_vm6, 0, %v1982_v51  ;;  %v1488_v60 = vadd.s32 %v2770_v57, %v2778_v54  ;;  %v1695_v0 = vmul.u32 %v2808_v32, %v1679_v12  ;;  %vm1697_vm8 = vc.u32 %v2873_v17, %v2855_v56  ;;  %v2062_v54 = vpop.f32.mrf.mxu0 }
 0x163   :  { %v1411_v30 = vmul.f32 %v1410_v53, %v1408_v18  ;;  %v1504_v25 = vsub.s32 32, %v1503_v23  ;;  %v1508_v58 = vsub.s32 4294967266, %v1503_v23  ;;  %v1759_v47 = vsub.s32 32, %v1758_v55 }
 0x164   :  { %v2885_v39 = vand.u32 3, %v1421_v43  ;;  %v1699_v8 = vsel %vm1697_vm8, %v1698_v11, %v2856_v33  ;;  %v2891_v9 = vsel %vm1434_vm7, %v1518_v24, %v2818_v10  ;;  %v1752_v20 = vor.u32 8388608, %v1751_v34  ;;  %v805_v48 = vpop.f32.mrf.mxu0 }
 0x165   :  { %v1412_v63 = vxor.u32 2147483648, %v1411_v30  ;;  %v1509_v2 = vadd.s32 127, %v1508_v58  ;;  %v1700_v13 = vadd.s32 %v1699_v8, %v1695_v0  ;;  %v2893_v57 = vshrl.u32 %v1756_v21, 5  ;;  %v2107_v58 = vpop.f32.mrf.mxu1 }
 0x166   :  { %v1505_v40 = vshll.u32 %v2829_v59, %v1503_v23  ;;  %v1506_v44 = vshrl.u32 %v1488_v60, %v1504_v25  ;;  %v1762_v10 = vshrl.u32 %v2296_v49, %v1759_v47  ;;  %v1765_v26 = vshrl.u32 %v2297_v19, %v1759_v47  ;;  %v2092_v18 = vpop.f32.mrf.mxu0 }
 0x167   :  { %v1413_v32 = vsel %vm1330_vm15, %v1412_v63, %v1411_v30  ;;  %v1510_v45 = vshll.u32 %v1509_v2, 23  ;;  %v1701_v22 = vadd.s32 536870912, %v1700_v13  ;;  %v1761_v33 = vshll.u32 %v2295_v46, %v1758_v55 }
 0x168   :  { %v1416_v50 = vsel %vm2795_vm14, %v2698_v52, %v1413_v32  ;;  %v1764_v35 = vshll.u32 %v2296_v49, %v1758_v55  ;;  %v1767_v4 = vshll.u32 %v2297_v19, %v1758_v55  ;;  %v1768_v1 = vshrl.u32 %v2298_v28, %v1759_v47 }
 0x169   :  { %2177 = vcosq.f32 %v1416_v50  ;;  %v1511_v15 = vor.u32 4788187, %v1510_v45  ;;  %v2905_v59 = vshrl.u32 %v1701_v22, 30  ;;  %v1507_v3 = vor.u32 %v1506_v44, %v1505_v40 }
 0x16a   :  { %2179 = vsinq.f32 %v1416_v50  ;;  %v1770_v7 = vshll.u32 %v2298_v28, %v1758_v55  ;;  %v1771_v5 = vshrl.u32 %v2299_v31, %v1759_v47  ;;  %v1774_v42 = vshrl.u32 %v2300_v6, %v1759_v47  ;;  %v1092_v50 = vpop.f32.mrf.mxu1 }
 0x16b   :  { %v1703_v43 = vshll.u32 %v2905_v59, 30  ;;  %v1763_v51 = vor.u32 %v1762_v10, %v1761_v33  ;;  %v1766_v12 = vor.u32 %v1765_v26, %v1764_v35  ;;  %v1769_v53 = vor.u32 %v1768_v1, %v1767_v4 }
 0x16c   :  { %v1512_v11 = vand.u32 2147483647, %v1511_v15  ;;  %v1772_v21 = vor.u32 %v1771_v5, %v1770_v7  ;;  %v1773_v23 = vshll.u32 %v2299_v31, %v1758_v55  ;;  %v923_v24 = vadd.f32 %v2077_v27, %v2062_v54 }
 0x16d   :  { %v2914_v34 = vsub.s32 %v1700_v13, %v1703_v43  ;;  %v1760_v30 = vshrl.u32 %v2295_v46, %v1759_v47  ;;  %vm1779_vm9 = vcmp.lt.s32.totalorder %v2893_v57, 4  ;;  %v2918_v25 = vshll.u32 %v1752_v20, 8  ;;  %v1006_v13 = vpop.f32.mrf.mxu0 }
 0x16e   :  { %v1514_v60 = vcvt.s32.f32 %v1507_v3  ;;  %v1775_v0 = vor.u32 %v1774_v42, %v1773_v23  ;;  %vm1776_vm10 = vcmp.lt.s32.totalorder %v2893_v57, 1  ;;  %v1781_v63 = vsel %vm1779_vm9, %v1769_v53, 2102212464 }
 0x16f   :  { %v1706_v2 = vsub.s32 0, %v2914_v34  ;;  %vm1778_vm11 = vcmp.lt.s32.totalorder %v2893_v57, 3  ;;  %v1784_v55 = vsel %vm1776_vm10, %v1763_v51, %v1766_v12  ;;  %v917_v8 = vadd.f32 %v916_v16, %v805_v48  ;;  %v2122_v22 = vpop.f32.mrf.mxu0  ;;  %v2137_v48 = vpop.f32.mrf.mxu1 }
 0x170   :  { %v2925_v47 = vmul.f32 %v1514_v60, %v1512_v11  ;;  %v1780_v54 = vsel %vm1776_vm10, %v1760_v30, %v1763_v51  ;;  %v1782_v20 = vsel %vm1778_vm11, %v1766_v12, %v1781_v63  ;;  %v1785_v32 = vsel %vm1779_vm9, %v1772_v21, 920167782 }
 0x171   :  { %v1989_v40 = vmin.u32 %v1706_v2, %v2914_v34  ;;  %vm1777_vm12 = vcmp.lt.s32.totalorder %v2893_v57, 2  ;;  %v1786_v44 = vsel %vm1778_vm11, %v1769_v53, %v1785_v32  ;;  %v1788_v45 = vsel %vm1776_vm10, %v1766_v12, %v1769_v53  ;;  %v1189_v53 = vpop.f32.mrf.mxu0 }
 0x172   :  { %v1696_v10 = vadd.s32 %v2855_v56, %v2873_v17  ;;  %v1726_v26 = vsub.s32 4, %v2905_v59  ;;  %v1787_v27 = vsel %vm1777_vm12, %v1784_v55, %v1786_v44  ;;  %v1789_v15 = vsel %vm1779_vm9, %v1775_v0, 1326507024 }
 0x173   :  { %v1708_v33 = vclz %v1989_v40  ;;  %v1783_v35 = vsel %vm1777_vm12, %v1780_v54, %v1782_v20  ;;  %v1790_v4 = vsel %vm1778_vm11, %v1772_v21, %v1789_v15  ;;  %v1014_v1 = vadd.f32 %v2092_v18, %v923_v24 }
 0x174   :  { %vm1420_vm13 = vweird.f32 %v2698_v52  ;;  %v1791_v3 = vsel %vm1777_vm12, %v1788_v45, %v1790_v4  ;;  %v2944_v7 = vmul.u32.u64.low %v2918_v25, %v1787_v27  ;;  %v2945_v5 = vmul.u32.u64.high %v2918_v25, %v1787_v27, %v2944_v7 }
 0x175   :  { %v1007_v56 = vadd.f32 %v1006_v13, %v917_v8  ;;  %vm2950_vm14 = vcmp.le.f32.partialorder %v1432_v61, 0.7853982  ;;  %v1516_v57 = vxor.u32 2147483648, %v2925_v47  ;;  %v1990_v43 = vadd.s32 4294967294, %v1708_v33  ;;  %v1272_v61 = vpop.f32.mrf.mxu1 }
 0x176   :  { %v2178_v17 = vpop.eup %2177  ;;  %v2956_v51 = vmul.u32.u64.low %v2918_v25, %v1791_v3  ;;  %v2957_v12 = vmul.u32.u64.high %v2918_v25, %v1791_v3, %v2956_v51  ;;  %v1799_v18 = vmul.u32 %v2918_v25, %v1783_v35  ;;  %v1101_v11 = vadd.f32 %v2107_v58, %v1014_v1 }
 0x177   :  { %v2180_v16 = vpop.eup %2179  ;;  %v1093_v21 = vadd.f32 %v1092_v50, %v1007_v56  ;;  %vm1423_vm15 = vcmp.lt.s32.totalorder %v2885_v39, 2  ;;  %vm1991_vm0 = vcmp.lt.s32.totalorder %v1990_v43, 0  ;;  %vm1424_vm1 = vcmp.eq.s32.totalorder %v2885_v39, 0 }
 0x178   :  { %v1425_v23 = vxor.u32 2147483648, %v2180_v16  ;;  %v1428_v24 = vxor.u32 2147483648, %v2178_v17  ;;  %v1711_v30 = vsel %vm1991_vm0, 0, %v1990_v43  ;;  %v1802_v60 = vadd.s32 1, %v2945_v5 }
 0x179   :  { %v1196_v0 = vadd.f32 %v2122_v22, %v1101_v11  ;;  %v1190_v63 = vadd.f32 %v1189_v53, %v1093_v21  ;;  %v1712_v2 = vsub.s32 32, %v1711_v30  ;;  %v1713_v55 = vshll.u32 %v2914_v34, %v1711_v30 }
 0x17a   :  { %v1716_v8 = vsub.s32 4294967266, %v1711_v30  ;;  %vm1427_vm2 = vcmp.eq.s32.totalorder %v2885_v39, 2  ;;  %vm1801_vm3 = vc.u32 %v2957_v12, %v2944_v7  ;;  %v1426_v13 = vsel %vm1424_vm1, %v2178_v17, %v1425_v23 }
 0x17b   :  { %v1279_v25 = vadd.f32 %v2137_v48, %v1196_v0  ;;  %v1273_v58 = vadd.f32 %v1272_v61, %v1190_v63  ;;  %v1714_v54 = vshrl.u32 %v1696_v10, %v1712_v2  ;;  %v1803_v32 = vsel %vm1801_vm3, %v1802_v60, %v2945_v5 }
 0x17c   :  { %v1717_v20 = vadd.s32 127, %v1716_v8  ;;  %v1429_v40 = vsel %vm1427_vm2, %v1428_v24, %v2180_v16  ;;  %v1804_v44 = vadd.s32 %v1803_v32, %v1799_v18  ;;  %vm1642_vm4 = vcmp.lt.s32.totalorder %v2708_v62, 0 }
 0x17d   :  { %v1304_v45 = vmul.f32 %v2786_v14, %v1279_v25  ;;  %v1301_v50 = vmul.f32 %v2786_v14, %v1273_v58  ;;  %v1430_v34 = vsel %vm1423_vm15, %v1426_v13, %v1429_v40  ;;  %v1715_v22 = vor.u32 %v1714_v54, %v1713_v55 }
 0x17e   :  { %v1718_v27 = vshll.u32 %v1717_v20, 23  ;;  %v1431_v15 = vsel %vm1420_vm13, nan, %v1430_v34  ;;  %v1521_v10 = vsel %vm2950_vm14, 0, %v2891_v9  ;;  %v1727_v33 = vsel %vm1642_vm4, %v1726_v26, %v2905_v59 }
 0x17f   :  { %v1805_v35 = vadd.s32 536870912, %v1804_v44  ;;  %v2982_v14 = vadd.f32 %v2867_v38, %v1304_v45  ;;  %1952 = vst [vmem:[#allocation8] sm:$0xff] %v1431_v15  ;;  %v1517_v39 = vsel %vm1434_vm7, %v1516_v57, %v2925_v47  ;;  %vm2989_vm5 = vcmp.le.f32.partialorder %v1640_v36, 0.7853982 }
 0x180   :  { %v1719_v9 = vor.u32 4788187, %v1718_v27  ;;  %v2994_v4 = vadd.f32 %v2867_v38, %v1301_v50  ;;  %vm1746_vm6 = vcmp.lt.s32.totalorder %v2719_v41, 0  ;;  %v1525_v48 = vadd.s32 3, %v1521_v10 }
 0x181   :  { %v1806_v59 = vshrl.u32 %v1805_v35, 30  ;;  %v1848_v26 = vand.u32 2147483647, %v2982_v14  ;;  %v1851_v1 = vand.u32 2139095040, %v2982_v14  ;;  %v1722_v47 = vcvt.s32.f32 %v1715_v22 }
 0x182   :  { %v1720_v3 = vand.u32 2147483647, %v1719_v9  ;;  %v1729_v36 = vsel %vm2989_vm5, 0, %v1727_v33  ;;  %v1520_v5 = vsel %vm2950_vm14, %v2702_v29, %v1517_v39  ;;  %v1536_v51 = vand.u32 2147483647, %v2994_v4 }
 0x183   :  { %v1807_v56 = vshll.u32 %v1806_v59, 30  ;;  %v1830_v38 = vsub.s32 4, %v1806_v59  ;;  %v1852_v17 = vshrl.u32 %v1851_v1, 23  ;;  %v1855_v43 = vand.u32 8388607, %v1848_v26 }
 0x184   :  { %v1723_v57 = vmul.f32 %v1722_v47, %v1720_v3  ;;  %v1539_v53 = vand.u32 2139095040, %v2994_v4  ;;  %v1733_v16 = vadd.s32 3, %v1729_v36  ;;  %vm3010_vm7 = vcmp.le.f32.partialorder %v1744_v37, 0.7853982 }
 0x185   :  { %v3014_v42 = vsub.s32 %v1804_v44, %v1807_v56  ;;  %v1996_v11 = vadd.s32 4294967169, %v1852_v17  ;;  %2181 = vcosq.f32 %v1520_v5  ;;  %v3016_v21 = vand.u32 3, %v1525_v48 }
 0x186   :  { %v1724_v61 = vxor.u32 2147483648, %v1723_v57  ;;  %v1540_v23 = vshrl.u32 %v1539_v53, 23  ;;  %2183 = vsinq.f32 %v1520_v5  ;;  %v3021_v30 = vsel %vm1746_vm6, %v1830_v38, %v1806_v59 }
 0x187   :  { %v1810_v24 = vsub.s32 0, %v3014_v42  ;;  %v1858_v60 = vadd.s32 1, %v1996_v11  ;;  %v1856_v0 = vor.u32 8388608, %v1855_v43  ;;  %v3027_v2 = vand.u32 8388607, %v1536_v51 }
 0x188   :  { %v1725_v37 = vsel %vm1642_vm4, %v1724_v61, %v1723_v57  ;;  %v1984_v63 = vadd.s32 4294967169, %v1540_v23  ;;  %v3032_v8 = vand.u32 3, %v1733_v16  ;;  %v1800_v58 = vadd.s32 %v2944_v7, %v2957_v12 }
 0x189   :  { %v1728_v55 = vsel %vm2989_vm5, %v2708_v62, %v1725_v37  ;;  %v1993_v25 = vmin.u32 %v1810_v24, %v3014_v42  ;;  %vm1859_vm8 = vcmp.gt.s32.totalorder %v1858_v60, 0  ;;  %v1833_v13 = vsel %vm3010_vm7, 0, %v3021_v30 }
 0x18a   :  { %v1860_v54 = vsel %vm1859_vm8, %v1858_v60, 0  ;;  %v1546_v20 = vadd.s32 1, %v1984_v63  ;;  %2185 = vcosq.f32 %v1728_v55  ;;  %v3042_v45 = vshll.u32 %v1856_v0, 8 }
 0x18b   :  { %v1812_v32 = vclz %v1993_v25  ;;  %v3040_v40 = vshrl.u32 %v1860_v54, 5  ;;  %v1862_v44 = vand.u32 31, %v1860_v54  ;;  %2187 = vsinq.f32 %v1728_v55 }
 0x18c   :  { %v1544_v50 = vor.u32 8388608, %v3027_v2  ;;  %vm1547_vm9 = vcmp.gt.s32.totalorder %v1546_v20, 0  ;;  %vm1528_vm12 = vcmp.eq.s32.totalorder %v3016_v21, 0  ;;  %vm1531_vm15 = vcmp.eq.s32.totalorder %v3016_v21, 2 }
 0x18d   :  { %v1994_v34 = vadd.s32 4294967294, %v1812_v32  ;;  %v1863_v22 = vsub.s32 32, %v1862_v44  ;;  %v1865_v7 = vshll.u32 %v2295_v46, %v1862_v44  ;;  %v1868_v12 = vshll.u32 %v2296_v49, %v1862_v44 }
 0x18e   :  { %v1871_v27 = vshll.u32 %v2297_v19, %v1862_v44  ;;  %v1874_v15 = vshll.u32 %v2298_v28, %v1862_v44  ;;  %v1877_v10 = vshll.u32 %v2299_v31, %v1862_v44  ;;  %vm1880_vm10 = vcmp.lt.s32.totalorder %v3040_v40, 1 }
 0x18f   :  { %vm1995_vm11 = vcmp.lt.s32.totalorder %v1994_v34, 0  ;;  %v1864_v33 = vshrl.u32 %v2295_v46, %v1863_v22  ;;  %v1866_v35 = vshrl.u32 %v2296_v49, %v1863_v22  ;;  %v1869_v39 = vshrl.u32 %v2297_v19, %v1863_v22 }
 0x190   :  { %v1815_v52 = vsel %vm1995_vm11, 0, %v1994_v34  ;;  %v1872_v9 = vshrl.u32 %v2298_v28, %v1863_v22  ;;  %v1875_v59 = vshrl.u32 %v2299_v31, %v1863_v22  ;;  %v1878_v1 = vshrl.u32 %v2300_v6, %v1863_v22 }
 0x191   :  { %v1816_v48 = vsub.s32 32, %v1815_v52  ;;  %v1817_v3 = vshll.u32 %v3014_v42, %v1815_v52  ;;  %v1820_v47 = vsub.s32 4294967266, %v1815_v52  ;;  %v1867_v36 = vor.u32 %v1866_v35, %v1865_v7 }
 0x192   :  { %v1870_v5 = vor.u32 %v1869_v39, %v1868_v12  ;;  %v1873_v56 = vor.u32 %v1872_v9, %v1871_v27  ;;  %v1876_v38 = vor.u32 %v1875_v59, %v1874_v15  ;;  %v1879_v17 = vor.u32 %v1878_v1, %v1877_v10  ;;  %v2182_v57 = vpop.eup %2181 }
 0x193   :  { %v1818_v43 = vshrl.u32 %v1800_v58, %v1816_v48  ;;  %v1821_v53 = vadd.s32 127, %v1820_v47  ;;  %vm1881_vm13 = vcmp.lt.s32.totalorder %v3040_v40, 2  ;;  %vm1882_vm14 = vcmp.lt.s32.totalorder %v3040_v40, 3  ;;  %v2184_v16 = vpop.eup %2183 }
 0x194   :  { %vm1883_vm0 = vcmp.lt.s32.totalorder %v3040_v40, 4  ;;  %v1884_v42 = vsel %vm1880_vm10, %v1864_v33, %v1867_v36  ;;  %v1888_v11 = vsel %vm1880_vm10, %v1867_v36, %v1870_v5  ;;  %v1892_v61 = vsel %vm1880_vm10, %v1870_v5, %v1873_v56 }
 0x195   :  { %v1819_v23 = vor.u32 %v1818_v43, %v1817_v3  ;;  %v1822_v24 = vshll.u32 %v1821_v53, 23  ;;  %v1885_v60 = vsel %vm1883_vm0, %v1873_v56, 2102212464  ;;  %v1889_v37 = vsel %vm1883_vm0, %v1876_v38, 920167782 }
 0x196   :  { %v1886_v0 = vsel %vm1882_vm14, %v1870_v5, %v1885_v60  ;;  %v1890_v63 = vsel %vm1882_vm14, %v1873_v56, %v1889_v37  ;;  %v1893_v2 = vsel %vm1883_vm0, %v1879_v17, 1326507024  ;;  %v1548_v55 = vsel %vm1547_vm9, %v1546_v20, 0 }
 0x197   :  { %v1823_v25 = vor.u32 4788187, %v1822_v24  ;;  %v1887_v58 = vsel %vm1881_vm13, %v1884_v42, %v1886_v0  ;;  %v1891_v54 = vsel %vm1881_vm13, %v1888_v11, %v1890_v63  ;;  %v1529_v32 = vxor.u32 2147483648, %v2184_v16  ;;  %v3078_v44 = vpop.eup %2185 }
 0x198   :  { %v1894_v34 = vsel %vm1882_vm14, %v1876_v38, %v1893_v2  ;;  %v3083_v22 = vmul.u32.u64.low %v3042_v45, %v1891_v54  ;;  %v3084_v7 = vmul.u32.u64.high %v3042_v45, %v1891_v54, %v3083_v22  ;;  %v1532_v12 = vxor.u32 2147483648, %v2182_v57  ;;  %v3087_v20 = vpop.eup %2187 }
 0x199   :  { %v1824_v27 = vand.u32 2147483647, %v1823_v25  ;;  %v1826_v15 = vcvt.s32.f32 %v1819_v23  ;;  %v1895_v10 = vsel %vm1881_vm13, %v1892_v61, %v1894_v34  ;;  %v1550_v33 = vand.u32 31, %v1548_v55 }
 0x19a   :  { %v3092_v35 = vmul.u32.u64.low %v3042_v45, %v1895_v10  ;;  %v3093_v39 = vmul.u32.u64.high %v3042_v45, %v1895_v10, %v3092_v35  ;;  %v1903_v52 = vmul.u32 %v3042_v45, %v1887_v58  ;;  %v3096_v9 = vshll.u32 %v1544_v50, 8 }
 0x19b   :  { %v1827_v59 = vmul.f32 %v1826_v15, %v1824_v27  ;;  %v1549_v1 = vshrl.u32 %v1548_v55, 5  ;;  %v1551_v48 = vsub.s32 32, %v1550_v33  ;;  %v1530_v3 = vsel %vm1528_vm12, %v2182_v57, %v1529_v32 }
 0x19c   :  { %v1906_v47 = vadd.s32 1, %v3084_v7  ;;  %v1553_v40 = vshll.u32 %v2295_v46, %v1550_v33  ;;  %v1556_v36 = vshll.u32 %v2296_v49, %v1550_v33  ;;  %v1533_v5 = vsel %vm1531_vm15, %v1532_v12, %v2184_v16 }
 0x19d   :  { %v1828_v56 = vxor.u32 2147483648, %v1827_v59  ;;  %v1554_v45 = vshrl.u32 %v2296_v49, %v1551_v48  ;;  %v1557_v50 = vshrl.u32 %v2297_v19, %v1551_v48  ;;  %v1559_v38 = vshll.u32 %v2297_v19, %v1550_v33 }
 0x19e   :  { %vm1527_vm1 = vcmp.lt.s32.totalorder %v3016_v21, 2  ;;  %vm1905_vm2 = vc.u32 %v3093_v39, %v3083_v22  ;;  %v1560_v17 = vshrl.u32 %v2298_v28, %v1551_v48  ;;  %v1562_v57 = vshll.u32 %v2298_v28, %v1550_v33 }
 0x19f   :  { %v1563_v43 = vshrl.u32 %v2299_v31, %v1551_v48  ;;  %v1829_v53 = vsel %vm1746_vm6, %v1828_v56, %v1827_v59  ;;  %v1907_v49 = vsel %vm1905_vm2, %v1906_v47, %v3084_v7  ;;  %v1555_v16 = vor.u32 %v1554_v45, %v1553_v40 }
 0x1a0   :  { %v1558_v42 = vor.u32 %v1557_v50, %v1556_v36  ;;  %v1832_v19 = vsel %vm3010_vm7, %v2719_v41, %v1829_v53  ;;  %v1908_v11 = vadd.s32 %v1907_v49, %v1903_v52  ;;  %v1561_v61 = vor.u32 %v1560_v17, %v1559_v38 }
 0x1a1   :  { %v1564_v23 = vor.u32 %v1563_v43, %v1562_v57  ;;  %2189 = vcosq.f32 %v1832_v19  ;;  %v1552_v24 = vshrl.u32 %v2295_v46, %v1551_v48  ;;  %v1565_v28 = vshll.u32 %v2299_v31, %v1550_v33 }
 0x1a2   :  { %v1566_v60 = vshrl.u32 %v2300_v6, %v1551_v48  ;;  %2191 = vsinq.f32 %v1832_v19  ;;  %v1909_v37 = vadd.s32 536870912, %v1908_v11  ;;  %vm1568_vm3 = vcmp.lt.s32.totalorder %v1549_v1, 1 }
 0x1a3   :  { %vm1571_vm4 = vcmp.lt.s32.totalorder %v1549_v1, 4  ;;  %vm1569_vm5 = vcmp.lt.s32.totalorder %v1549_v1, 2  ;;  %v1576_v2 = vsel %vm1568_vm3, %v1555_v16, %v1558_v42  ;;  %vm1570_vm6 = vcmp.lt.s32.totalorder %v1549_v1, 3 }
 0x1a4   :  { %v1567_v0 = vor.u32 %v1566_v60, %v1565_v28  ;;  %v1573_v63 = vsel %vm1571_vm4, %v1561_v61, 2102212464  ;;  %v3123_v55 = vshrl.u32 %v1909_v37, 30  ;;  %v1577_v25 = vsel %vm1571_vm4, %v1564_v23, 920167782 }
 0x1a5   :  { %v1580_v58 = vsel %vm1568_vm3, %v1558_v42, %v1561_v61  ;;  %v1572_v54 = vsel %vm1568_vm3, %v1552_v24, %v1555_v16  ;;  %v1574_v32 = vsel %vm1570_vm6, %v1558_v42, %v1573_v63  ;;  %v1578_v46 = vsel %vm1570_vm6, %v1561_v61, %v1577_v25 }
 0x1a6   :  { %v1581_v34 = vsel %vm1571_vm4, %v1567_v0, 1326507024  ;;  %v1911_v31 = vshll.u32 %v3123_v55, 30  ;;  %v1579_v6 = vsel %vm1569_vm5, %v1576_v2, %v1578_v46  ;;  %v1534_v12 = vsel %vm1527_vm1, %v1530_v3, %v1533_v5 }
 0x1a7   :  { %v1582_v7 = vsel %vm1570_vm6, %v1564_v23, %v1581_v34  ;;  %vm1524_vm8 = vweird.f32 %v2702_v29  ;;  %v3132_v15 = vmul.u32.u64.low %v3096_v9, %v1579_v6  ;;  %v3133_v10 = vmul.u32.u64.high %v3096_v9, %v1579_v6, %v3132_v15 }
 0x1a8   :  { %v1583_v27 = vsel %vm1569_vm5, %v1580_v58, %v1582_v7  ;;  %v1837_v33 = vadd.s32 3, %v1833_v13  ;;  %v1912_v35 = vsub.s32 %v1908_v11, %v1911_v31  ;;  %v1575_v21 = vsel %vm1569_vm5, %v1572_v54, %v1574_v32 }
 0x1a9   :  { %v3141_v52 = vmul.u32.u64.low %v3096_v9, %v1583_v27  ;;  %v3142_v59 = vmul.u32.u64.high %v3096_v9, %v1583_v27, %v3141_v52  ;;  %v1535_v29 = vsel %vm1524_vm8, nan, %v1534_v12  ;;  %v1737_v48 = vxor.u32 2147483648, %v3087_v20 }
 0x1aa   :  { %v1740_v3 = vxor.u32 2147483648, %v3078_v44  ;;  %v1914_v47 = vsub.s32 0, %v1912_v35  ;;  %vm1736_vm9 = vcmp.eq.s32.totalorder %v3032_v8, 0  ;;  %vm1739_vm10 = vcmp.eq.s32.totalorder %v3032_v8, 2  ;;  %1953 = vst [vmem:[#allocation8 + $0x8] sm:$0xff] %v1535_v29 }
 0x1ab   :  { %v1594_v18 = vadd.s32 1, %v3133_v10  ;;  %vm1735_vm7 = vcmp.lt.s32.totalorder %v3032_v8, 2  ;;  %v1738_v30 = vsel %vm1736_vm9, %v3078_v44, %v1737_v48  ;;  %v1838_v1 = vand.u32 3, %v1837_v33 }
 0x1ac   :  { %v1741_v13 = vsel %vm1739_vm10, %v1740_v3, %v3087_v20  ;;  %v1997_v40 = vmin.u32 %v1914_v47, %v1912_v35  ;;  %v1591_v36 = vmul.u32 %v3096_v9, %v1575_v21  ;;  %vm1593_vm11 = vc.u32 %v3142_v59, %v3132_v15 }
 0x1ad   :  { %vm1732_vm12 = vweird.f32 %v2708_v62  ;;  %v1595_v5 = vsel %vm1593_vm11, %v1594_v18, %v3133_v10  ;;  %v1742_v56 = vsel %vm1735_vm7, %v1738_v30, %v1741_v13  ;;  %vm1843_vm13 = vcmp.eq.s32.totalorder %v1838_v1, 2 }
 0x1ae   :  { %v2190_v45 = vpop.eup %2189  ;;  %v1916_v50 = vclz %v1997_v40  ;;  %v1596_v38 = vadd.s32 %v1595_v5, %v1591_v36  ;;  %v1743_v8 = vsel %vm1732_vm12, nan, %v1742_v56  ;;  %vm1840_vm14 = vcmp.eq.s32.totalorder %v1838_v1, 0 }
 0x1af   :  { %v2192_v17 = vpop.eup %2191  ;;  %v1844_v44 = vxor.u32 2147483648, %v2190_v45  ;;  %1955 = vst [vmem:[#allocation8 + $0x18] sm:$0xff] %v1743_v8  ;;  %vm1839_vm0 = vcmp.lt.s32.totalorder %v1838_v1, 2  ;;  %vm1836_vm1 = vweird.f32 %v2719_v41  ;;  %v1904_v42 = vadd.s32 %v3083_v22, %v3093_v39 }
 0x1b0   :  { %v1998_v20 = vadd.s32 4294967294, %v1916_v50  ;;  %v1597_v57 = vadd.s32 536870912, %v1596_v38  ;;  %v1841_v43 = vxor.u32 2147483648, %v2192_v17  ;;  %vm3166_vm3 = vcmp.le.f32.partialorder %v1848_v26, 0.7853982 }
 0x1b1   :  { %v1845_v9 = vsel %vm1843_vm13, %v1844_v44, %v2192_v17  ;;  %vm1850_vm4 = vcmp.lt.s32.totalorder %v2982_v14, 0  ;;  %v1934_v31 = vsub.s32 4, %v3123_v55  ;;  %v1592_v12 = vadd.s32 %v3132_v15, %v3142_v59 }
 0x1b2   :  { %vm1999_vm15 = vcmp.lt.s32.totalorder %v1998_v20, 0  ;;  %v3158_v53 = vshrl.u32 %v1597_v57, 30  ;;  %v1842_v62 = vsel %vm1840_vm14, %v2190_v45, %v1841_v43  ;;  %vm1538_vm5 = vcmp.lt.s32.totalorder %v2994_v4, 0 }
 0x1b3   :  { %v1919_v49 = vsel %vm1999_vm15, 0, %v1998_v20  ;;  %v1846_v16 = vsel %vm1839_vm0, %v1842_v62, %v1845_v9  ;;  %v1935_v21 = vsel %vm1850_vm4, %v1934_v31, %v3123_v55  ;;  %vm3184_vm6 = vcmp.le.f32.partialorder %v1536_v51, 0.7853982 }
 0x1b4   :  { %v1920_v19 = vsub.s32 32, %v1919_v49  ;;  %v1924_v11 = vsub.s32 4294967266, %v1919_v49  ;;  %v1599_v61 = vshll.u32 %v3158_v53, 30  ;;  %v1847_v23 = vsel %vm1836_vm1, nan, %v1846_v16 }
 0x1b5   :  { %v1921_v24 = vshll.u32 %v1912_v35, %v1919_v49  ;;  %1956 = vst [vmem:[#allocation8 + $0x20] sm:$0xff] %v1847_v23  ;;  %v1937_v3 = vsel %vm3166_vm3, 0, %v1935_v21  ;;  %v1622_v40 = vsub.s32 4, %v3158_v53  ;;  %vm1940_vm7 = vweird.f32 %v2982_v14 }
 0x1b6   :  { %v1922_v28 = vshrl.u32 %v1904_v42, %v1920_v19  ;;  %v1925_v60 = vadd.s32 127, %v1924_v11  ;;  %v1600_v37 = vsub.s32 %v1596_v38, %v1599_v61  ;;  %v1941_v18 = vadd.s32 3, %v1937_v3 }
 0x1b7   :  { %v1623_v38 = vsel %vm1538_vm5, %v1622_v40, %v3158_v53  ;;  %vm1628_vm14 = vweird.f32 %v2994_v4 }
 0x1b8   :  { %v1923_v0 = vor.u32 %v1922_v28, %v1921_v24  ;;  %v1926_v63 = vshll.u32 %v1925_v60, 23  ;;  %v1602_v2 = vsub.s32 0, %v1600_v37  ;;  %v1942_v1 = vand.u32 3, %v1941_v18 }
 0x1b9   :  { %v1625_v44 = vsel %vm3184_vm6, 0, %v1623_v38 }
 0x1ba   :  { %v1927_v25 = vor.u32 4788187, %v1926_v63  ;;  %v1985_v41 = vmin.u32 %v1602_v2, %v1600_v37  ;;  %v1930_v54 = vcvt.s32.f32 %v1923_v0  ;;  %vm1947_vm8 = vcmp.eq.s32.totalorder %v1942_v1, 2 }
 0x1bb   :  { %vm1944_vm9 = vcmp.eq.s32.totalorder %v1942_v1, 0  ;;  %vm1943_vm10 = vcmp.lt.s32.totalorder %v1942_v1, 2  ;;  %v1629_v43 = vadd.s32 3, %v1625_v44 }
 0x1bc   :  { %v1928_v58 = vand.u32 2147483647, %v1927_v25  ;;  %v1604_v32 = vclz %v1985_v41 }
 0x1bd   :  { %v1630_v9 = vand.u32 3, %v1629_v43 }
 0x1be   :  { %v1931_v46 = vmul.f32 %v1930_v54, %v1928_v58  ;;  %v1986_v22 = vadd.s32 4294967294, %v1604_v32 }
 0x1bf   :  { %vm1635_vm11 = vcmp.eq.s32.totalorder %v1630_v9, 2  ;;  %vm1632_vm12 = vcmp.eq.s32.totalorder %v1630_v9, 0  ;;  %vm1631_vm13 = vcmp.lt.s32.totalorder %v1630_v9, 2 }
 0x1c0   :  { %v1932_v39 = vxor.u32 2147483648, %v1931_v46  ;;  %vm1987_vm2 = vcmp.lt.s32.totalorder %v1986_v22, 0 }
 0x1c1   :  { %v1607_v6 = vsel %vm1987_vm2, 0, %v1986_v22 }
 0x1c2   :  { %v1933_v7 = vsel %vm1850_vm4, %v1932_v39, %v1931_v46  ;;  %v1608_v27 = vsub.s32 32, %v1607_v6  ;;  %v1612_v10 = vsub.s32 4294967266, %v1607_v6  ;;  %v1609_v26 = vshll.u32 %v1600_v37, %v1607_v6 }
 0x1c3   :  { %v1936_v33 = vsel %vm3166_vm3, %v2982_v14, %v1933_v7 }
 0x1c4   :  { %2193 = vcosq.f32 %v1936_v33  ;;  %v1610_v35 = vshrl.u32 %v1592_v12, %v1608_v27  ;;  %v1613_v52 = vadd.s32 127, %v1612_v10 }
 0x1c5   :  { %2195 = vsinq.f32 %v1936_v33 }
 0x1c6   :  { %v1611_v29 = vor.u32 %v1610_v35, %v1609_v26  ;;  %v1614_v48 = vshll.u32 %v1613_v52, 23 }
 0x1c8   :  { %v1615_v47 = vor.u32 4788187, %v1614_v48  ;;  %v1618_v59 = vcvt.s32.f32 %v1611_v29 }
 0x1ca   :  { %v1616_v15 = vand.u32 2147483647, %v1615_v47 }
 0x1cc   :  { %v1619_v30 = vmul.f32 %v1618_v59, %v1616_v15 }
 0x1ce   :  { %v1620_v13 = vxor.u32 2147483648, %v1619_v30 }
 0x1d0   :  { %v1621_v36 = vsel %vm1538_vm5, %v1620_v13, %v1619_v30 }
 0x1d1   :  { %v2194_v5 = vpop.eup %2193  ;;  %v1624_v56 = vsel %vm3184_vm6, %v2994_v4, %v1621_v36 }
 0x1d2   :  { %v2196_v45 = vpop.eup %2195  ;;  %2197 = vcosq.f32 %v1624_v56  ;;  %v1948_v50 = vxor.u32 2147483648, %v2194_v5 }
 0x1d3   :  { %2199 = vsinq.f32 %v1624_v56  ;;  %v1945_v8 = vxor.u32 2147483648, %v2196_v45 }
 0x1d4   :  { %v1949_v17 = vsel %vm1947_vm8, %v1948_v50, %v2196_v45 }
 0x1d5   :  { %v1946_v51 = vsel %vm1944_vm9, %v2194_v5, %v1945_v8 }
 0x1d6   :  { %v1950_v20 = vsel %vm1943_vm10, %v1946_v51, %v1949_v17 }
 0x1d7   :  { %v1951_v57 = vsel %vm1940_vm7, nan, %v1950_v20 }
 0x1d8   :  { %1957 = vst [vmem:[#allocation8 + $0x28] sm:$0xff] %v1951_v57 }
 0x1df   :  { %v2198_v62 = vpop.eup %2197 }
 0x1e0   :  { %v2200_v49 = vpop.eup %2199  ;;  %v1636_v53 = vxor.u32 2147483648, %v2198_v62 }
 0x1e1   :  { %v1633_v16 = vxor.u32 2147483648, %v2200_v49 }
 0x1e2   :  { %v1637_v42 = vsel %vm1635_vm11, %v1636_v53, %v2200_v49 }
 0x1e3   :  { %v1634_v19 = vsel %vm1632_vm12, %v2198_v62, %v1633_v16 }
 0x1e4   :  { %v1638_v14 = vsel %vm1631_vm13, %v1634_v19, %v1637_v42 }
 0x1e5   :  { %v1639_v11 = vsel %vm1628_vm14, nan, %v1638_v14 }
 0x1e6   :  { %1954 = vst [vmem:[#allocation8 + $0x10] sm:$0xff] %v1639_v11 }
 0x1e7   :  { %2272 = shalt.err (!%p2269_p5)
}
 0x1e8   :  { %1969 = dma.vmem_to_hbm [thread:$0]  %s1964_s8, 768, %s3206_s4, [#allocation4], %s2288_s18, %s2288_s18, %s2289_s19  }
 0x1e9   :  { %2285 = dma.done.wait [#allocation4], 768  }
 0x1ea   :  { %2286 = vsyncadd [#allocation4], 4294966528 }
 0x1eb   :  { %1973 = vsyncpa [#allocation3], 1 }
 0x1ec   :  { %1974 = vsyncpa [#allocation6], 1 }
 0x1ed   :  { %1975 = vsyncpa [#allocation4], 1 }

</bundles_post_ra>
